<compile_context>
chip_gen: v6e
topology: v6e:2x2x1
jax: 0.10.0
libtpu: 0.0.40
codegen_flags: <defaults>
</compile_context>

<pallas_src>
import numpy as np
import jax
import jax.numpy as jnp
from jax.experimental import pallas as pl
from jax.experimental.pallas import tpu as pltpu


# ----------------------------------------------------------------------------
# Host-side weight packing (static, tiny at these sizes)
# ----------------------------------------------------------------------------
def _banded_conv_weight(w_hwio, dilation, width):
    """Fold a (3,3,Cin,Cout) dilated conv into 3 banded matrices.

    Returns B of shape (3, (W+2d)*Cin, W*Cout) so that, with the padded
    activation stored as (Hp, Wp*Cin) (pixel-major, channel interleaved),
        out = sum_ky  pad[ky*d : ky*d+H, :] @ B[ky]
    equals the dilated 3x3 convolution output in (H, W*Cout) layout.
    """
    w = np.asarray(w_hwio, dtype=np.float32)
    _, _, cin, cout = w.shape
    d = int(dilation)
    wp = width + 2 * d
    B = np.zeros((3, wp * cin, width * cout), dtype=np.float32)
    for ky in range(3):
        for kx in range(3):
            for j in range(width):
                r = (j + kx * d) * cin
                c = j * cout
                B[ky, r:r + cin, c:c + cout] = w[ky, kx]
    return jnp.asarray(B)


def _blockdiag_1x1_weight(w_io, width):
    """(Cin, Cout) 1x1 conv weight -> block-diagonal (W*Cin, W*Cout)."""
    w = np.asarray(w_io, dtype=np.float32)
    cin, cout = w.shape
    D = np.zeros((width * cin, width * cout), dtype=np.float32)
    for j in range(width):
        D[j * cin:(j + 1) * cin, j * cout:(j + 1) * cout] = w
    return jnp.asarray(D)


def _row_bias(b, width):
    """(Cout,) bias -> (1, W*Cout) row matching the (H, W*Cout) layout."""
    return jnp.asarray(np.tile(np.asarray(b, dtype=np.float32), width)[None, :])


# ----------------------------------------------------------------------------
# Fused kernel: 3x (replication-pad -> dilated 3x3 conv -> ReLU)
#               -> multiscale concat (implicit) -> 1x1 conv -> PReLU
# ----------------------------------------------------------------------------
def _make_fused_kernel(H, W, cins, dilations, n_ms):
    n_blocks = len(dilations)

    def kernel(*refs):
        pos = 0
        x_ref = refs[pos]; pos += 1
        B_refs = refs[pos:pos + n_blocks]; pos += n_blocks
        brow_refs = refs[pos:pos + n_blocks]; pos += n_blocks
        D_refs = refs[pos:pos + n_ms]; pos += n_ms
        bout_ref = refs[pos]; pos += 1
        alpha_ref = refs[pos]; pos += 1
        out_ref = refs[pos]; pos += 1
        pad_refs = refs[pos:pos + n_blocks]

        act = x_ref[0]                                   # (H, W*Cin) f32
        feats = []
        for b in range(n_blocks):
            d = dilations[b]
            cin = cins[b]
            Hp = H + 2 * d
            pad = pad_refs[b]

            # ---- replication pad into VMEM scratch (Hp, (W+2d)*cin) ------
            pad[d:d + H, d * cin:(d + W) * cin] = act
            pad[0:d, d * cin:(d + W) * cin] = jnp.broadcast_to(
                act[0:1, :], (d, W * cin))
            pad[d + H:Hp, d * cin:(d + W) * cin] = jnp.broadcast_to(
                act[H - 1:H, :], (d, W * cin))
            # left / right pixel columns (corners come for free: the source
            # columns already contain the replicated top/bottom rows).
            left = pad[:, d * cin:(d + 1) * cin]
            right = pad[:, (d + W - 1) * cin:(d + W) * cin]
            for k in range(d):
                pad[:, k * cin:(k + 1) * cin] = left
                pad[:, (d + W + k) * cin:(d + W + k + 1) * cin] = right

            # ---- dilated 3x3 conv: 3 banded MXU matmuls + bias + ReLU ----
            B = B_refs[b]
            y = jnp.dot(pad[0:H, :], B[0],
                        preferred_element_type=jnp.float32)
            y = y + jnp.dot(pad[d:d + H, :], B[1],
                            preferred_element_type=jnp.float32)
            y = y + jnp.dot(pad[2 * d:2 * d + H, :], B[2],
                            preferred_element_type=jnp.float32)
            y = jnp.maximum(y + brow_refs[b][...], 0.0)   # bias + ReLU
            act = y
            feats.append(y)

        # ---- multiscale "concat" + 1x1 conv as summed block-diag matmuls --
        sel = feats[-n_ms:]
        z = jnp.dot(sel[0], D_refs[0][...], preferred_element_type=jnp.float32)
        for k in range(1, n_ms):
            z = z + jnp.dot(sel[k], D_refs[k][...],
                            preferred_element_type=jnp.float32)
        z = z + bout_ref[...]
        alpha = alpha_ref[0, 0]                           # SMEM scalar
        z = jnp.where(z >= 0.0, z, alpha * z)             # PReLU (shared alpha)
        out_ref[0] = z.astype(out_ref.dtype)

    return kernel


def lagrange_multipliers_initializer(x, params, multiscale_depth):
    """x: (N, H, W, in_channels) NHWC float32 -> (N, H, W, out_channels)."""
    n, H, W, cin0 = x.shape
    blocks = params["blocks"]                    # [(w(3,3,ci,co), b(co,), d)]
    channels = [int(w.shape[-1]) for (w, _, _) in blocks]
    dilations = [int(d) for (_, _, d) in blocks]
    cins = [int(cin0)] + channels[:-1]
    out_channels = int(params["out_w"].shape[-1])
    n_ms = multiscale_depth if multiscale_depth > 1 else 1
    ms_couts = channels[-n_ms:]

    # ---- host-side weight packing --------------------------------------
    B_list = [_banded_conv_weight(w, d, W) for (w, _, d) in blocks]
    brow_list = [_row_bias(b, W) for (_, b, _) in blocks]
    D_list, off = [], 0
    for c in ms_couts:
        D_list.append(_blockdiag_1x1_weight(params["out_w"][off:off + c, :], W))
        off += c
    bout_row = _row_bias(params["out_b"], W)
    alpha = params["alpha"].reshape(1, 1).astype(jnp.float32)

    xf = x.reshape(n, H, W * cin0)               # lane-dense (H, W*Cin) tiles

    kernel = _make_fused_kernel(H, W, cins, dilations, n_ms)

    in_specs = [pl.BlockSpec((1, H, W * cin0), lambda i: (i, 0, 0))]
    for b in range(len(blocks)):
        kb = (W + 2 * dilations[b]) * cins[b]
        nb = W * channels[b]
        in_specs.append(pl.BlockSpec((3, kb, nb), lambda i: (0, 0, 0)))
    for b in range(len(blocks)):
        in_specs.append(pl.BlockSpec((1, W * channels[b]), lambda i: (0, 0)))
    for c in ms_couts:
        in_specs.append(pl.BlockSpec((W * c, W * out_channels),
                                     lambda i: (0, 0)))
    in_specs.append(pl.BlockSpec((1, W * out_channels), lambda i: (0, 0)))
    in_specs.append(pl.BlockSpec(memory_space=pltpu.MemorySpace.SMEM))  # alpha

    out_spec = pl.BlockSpec((1, H, W * out_channels), lambda i: (i, 0, 0))

    scratch_shapes = [
        pltpu.VMEM((H + 2 * dilations[b], (W + 2 * dilations[b]) * cins[b]),
                   jnp.float32)
        for b in range(len(blocks))
    ]

    out = pl.pallas_call(
        kernel,
        out_shape=jax.ShapeDtypeStruct((n, H, W * out_channels), jnp.float32),
        grid=(n,),
        in_specs=in_specs,
        out_specs=out_spec,
        scratch_shapes=scratch_shapes,
        compiler_params=pltpu.CompilerParams(
            dimension_semantics=("parallel",),
            vmem_limit_bytes=64 * 1024 * 1024,
        ),
    )(xf, *B_list, *brow_list, *D_list, bout_row, alpha)

    return out.reshape(n, H, W, out_channels)


# ----------------------------------------------------------------------------
# Deterministic parameter init (matches the PyTorch module's structure)
# ----------------------------------------------------------------------------
def init_params(key, in_channels, out_channels, channels, dilations,
                multiscale_depth):
    params = {"blocks": []}
    tch = in_channels
    for c, d in zip(channels, dilations):
        key, k1, k2 = jax.random.split(key, 3)
        fan_in = tch * 9
        bound = 1.0 / (fan_in ** 0.5)
        w = jax.random.uniform(k1, (3, 3, tch, c), jnp.float32, -bound, bound)
        b = jax.random.uniform(k2, (c,), jnp.float32, -bound, bound)
        params["blocks"].append((w, b, int(d)))
        tch = c
    tch = int(sum(channels[-multiscale_depth:])) if multiscale_depth > 1 \
        else int(channels[-1])
    key, k1, k2 = jax.random.split(key, 3)
    bound = 1.0 / (tch ** 0.5)
    params["out_w"] = jax.random.uniform(
        k1, (tch, out_channels), jnp.float32, -bound, bound)
    params["out_b"] = jax.random.uniform(
        k2, (out_channels,), jnp.float32, -bound, bound)
    params["alpha"] = jnp.full((1, 1), 0.25, jnp.float32)   # nn.PReLU() default
    return params


def _reference_forward(x, params, multiscale_depth):
    """Pure-JAX reference (lax conv) for correctness checking."""
    feats = []
    for w, b, d in params["blocks"]:
        xp = jnp.pad(x, ((0, 0), (d, d), (d, d), (0, 0)), mode="edge")
        y = jax.lax.conv_general_dilated(
            xp, w, window_strides=(1, 1), padding="VALID",
            rhs_dilation=(d, d),
            dimension_numbers=("NHWC", "HWIO", "NHWC"))
        x = jax.nn.relu(y + b)
        if multiscale_depth > 1:
            feats.append(x)
    if multiscale_depth > 1:
        x = jnp.concatenate(feats[-multiscale_depth:], axis=-1)
    y = jnp.einsum("nhwc,cd->nhwd", x, params["out_w"]) + params["out_b"]
    a = params["alpha"][0, 0]
    return jnp.where(y >= 0.0, y, a * y)


if __name__ == "__main__":
    # Small config consistent with the module's __init__.
    in_channels, out_channels = 4, 4
    channels = (8, 8, 16)
    dilations = (1, 2, 4)
    multiscale_depth = 2
    N, H, W = 2, 16, 16

    key = jax.random.PRNGKey(0)
    kx, kp = jax.random.split(key)
    # NHWC input (equivalent to PyTorch NCHW (2, 4, 16, 16)).
    x = jax.random.normal(kx, (N, H, W, in_channels), jnp.float32)
    params = init_params(kp, in_channels, out_channels, channels, dilations,
                         multiscale_depth)

    out = lagrange_multipliers_initializer(x, params, multiscale_depth)
    jax.block_until_ready(out)
    assert out.shape == (N, H, W, out_channels), out.shape

    ref = _reference_forward(x, params, multiscale_depth)
    max_err = float(jnp.max(jnp.abs(out - ref)))
    assert jnp.allclose(out, ref, atol=5e-4, rtol=5e-4), max_err

    print("KERNEL_OK")
</pallas_src>

<mosaic_0001>
module attributes {stable_mosaic.version = 11 : i64} {
  func.func @kernel(%arg0: i32, %arg1: memref<1x16x64xf32, #tpu.memory_space<vmem>>, %arg2: memref<3x72x128xf32, #tpu.memory_space<vmem>>, %arg3: memref<3x160x128xf32, #tpu.memory_space<vmem>>, %arg4: memref<3x192x256xf32, #tpu.memory_space<vmem>>, %arg5: memref<1x128xf32, #tpu.memory_space<vmem>>, %arg6: memref<1x128xf32, #tpu.memory_space<vmem>>, %arg7: memref<1x256xf32, #tpu.memory_space<vmem>>, %arg8: memref<128x64xf32, #tpu.memory_space<vmem>>, %arg9: memref<256x64xf32, #tpu.memory_space<vmem>>, %arg10: memref<1x64xf32, #tpu.memory_space<vmem>>, %arg11: memref<1x1xf32, #tpu.memory_space<smem>>, %arg12: memref<1x16x64xf32, #tpu.memory_space<vmem>>, %arg13: memref<18x72xf32, #tpu.memory_space<vmem>>, %arg14: memref<20x160xf32, #tpu.memory_space<vmem>>, %arg15: memref<24x192xf32, #tpu.memory_space<vmem>>) attributes {dimension_semantics = [#tpu.dimension_semantics<parallel>], iteration_bounds = array<i64: 2>, scalar_prefetch = 0 : i64, scratch_operands = 3 : i64, tpu.core_type = #tpu.core_type<tc>, window_params = [{transform_indices = @transform_0, window_bounds = array<i64: 1, 16, 64>}, {pipeline_mode = #tpu.pipeline_mode<synchronous>, transform_indices = @transform_1, window_bounds = array<i64: 3, 72, 128>}, {pipeline_mode = #tpu.pipeline_mode<synchronous>, transform_indices = @transform_2, window_bounds = array<i64: 3, 160, 128>}, {pipeline_mode = #tpu.pipeline_mode<synchronous>, transform_indices = @transform_3, window_bounds = array<i64: 3, 192, 256>}, {pipeline_mode = #tpu.pipeline_mode<synchronous>, transform_indices = @transform_4, window_bounds = array<i64: 1, 128>}, {pipeline_mode = #tpu.pipeline_mode<synchronous>, transform_indices = @transform_5, window_bounds = array<i64: 1, 128>}, {pipeline_mode = #tpu.pipeline_mode<synchronous>, transform_indices = @transform_6, window_bounds = array<i64: 1, 256>}, {pipeline_mode = #tpu.pipeline_mode<synchronous>, transform_indices = @transform_7, window_bounds = array<i64: 128, 64>}, {pipeline_mode = #tpu.pipeline_mode<synchronous>, transform_indices = @transform_8, window_bounds = array<i64: 256, 64>}, {pipeline_mode = #tpu.pipeline_mode<synchronous>, transform_indices = @transform_9, window_bounds = array<i64: 1, 64>}, {transform_indices = @transform_10, window_bounds = array<i64: 1, 1>}, {transform_indices = @transform_11, window_bounds = array<i64: 1, 16, 64>}]} {
    %c0 = arith.constant 0 : index
    %c0_0 = arith.constant 0 : index
    %c0_1 = arith.constant 0 : index
    %0 = vector.load %arg1[%c0, %c0_0, %c0_1] : memref<1x16x64xf32, #tpu.memory_space<vmem>>, vector<1x16x64xf32>
    %1 = vector.shape_cast %0 : vector<1x16x64xf32> to vector<16x64xf32>
    %c1 = arith.constant 1 : index
    %c4 = arith.constant 4 : index
    %2 = vector.load %arg13[%c1, %c4] : memref<18x72xf32, #tpu.memory_space<vmem>>, vector<16x64xf32>
    tpu.vector_store %arg13[%c1, %c4], %1 {strides = array<i32>} : memref<18x72xf32, #tpu.memory_space<vmem>>, vector<16x64xf32>,
    %3 = vector.extract_strided_slice %1 {offsets = [0, 0], sizes = [1, 64], strides = [1, 1]} : vector<16x64xf32> to vector<1x64xf32>
    %c0_2 = arith.constant 0 : index
    %c4_3 = arith.constant 4 : index
    %4 = vector.load %arg13[%c0_2, %c4_3] : memref<18x72xf32, #tpu.memory_space<vmem>>, vector<1x64xf32>
    tpu.vector_store %arg13[%c0_2, %c4_3], %3 {strides = array<i32>} : memref<18x72xf32, #tpu.memory_space<vmem>>, vector<1x64xf32>,
    %5 = vector.extract_strided_slice %1 {offsets = [15, 0], sizes = [1, 64], strides = [1, 1]} : vector<16x64xf32> to vector<1x64xf32>
    %c17 = arith.constant 17 : index
    %c4_4 = arith.constant 4 : index
    %6 = vector.load %arg13[%c17, %c4_4] : memref<18x72xf32, #tpu.memory_space<vmem>>, vector<1x64xf32>
    tpu.vector_store %arg13[%c17, %c4_4], %5 {strides = array<i32>} : memref<18x72xf32, #tpu.memory_space<vmem>>, vector<1x64xf32>,
    %c0_5 = arith.constant 0 : index
    %c4_6 = arith.constant 4 : index
    %7 = vector.load %arg13[%c0_5, %c4_6] : memref<18x72xf32, #tpu.memory_space<vmem>>, vector<18x4xf32>
    %c0_7 = arith.constant 0 : index
    %c64 = arith.constant 64 : index
    %8 = vector.load %arg13[%c0_7, %c64] : memref<18x72xf32, #tpu.memory_space<vmem>>, vector<18x4xf32>
    %c0_8 = arith.constant 0 : index
    %c0_9 = arith.constant 0 : index
    %9 = vector.load %arg13[%c0_8, %c0_9] : memref<18x72xf32, #tpu.memory_space<vmem>>, vector<18x4xf32>
    tpu.vector_store %arg13[%c0_8, %c0_9], %7 {strides = array<i32>} : memref<18x72xf32, #tpu.memory_space<vmem>>, vector<18x4xf32>,
    %c0_10 = arith.constant 0 : index
    %c68 = arith.constant 68 : index
    %10 = vector.load %arg13[%c0_10, %c68] : memref<18x72xf32, #tpu.memory_space<vmem>>, vector<18x4xf32>
    tpu.vector_store %arg13[%c0_10, %c68], %8 {strides = array<i32>} : memref<18x72xf32, #tpu.memory_space<vmem>>, vector<18x4xf32>,
    %c0_11 = arith.constant 0 : index
    %c0_12 = arith.constant 0 : index
    %11 = vector.load %arg13[%c0_11, %c0_12] : memref<18x72xf32, #tpu.memory_space<vmem>>, vector<16x72xf32>
    %c0_13 = arith.constant 0 : index
    %c0_14 = arith.constant 0 : index
    %c0_15 = arith.constant 0 : index
    %12 = vector.load %arg2[%c0_13, %c0_14, %c0_15] : memref<3x72x128xf32, #tpu.memory_space<vmem>>, vector<1x72x128xf32>
    %13 = vector.shape_cast %12 : vector<1x72x128xf32> to vector<72x128xf32>
    %cst = arith.constant dense<0.000000e+00> : vector<16x128xf32>
    %14 = tpu.matmul %11, %13, %cst {dimension_numbers = #tpu.dot_dimension_numbers<[1], [0], [0], [1], [0, 0, 1, 1], [], []>} : vector<16x72xf32>, vector<72x128xf32>, vector<16x128xf32> -> vector<16x128xf32>
    %c1_16 = arith.constant 1 : index
    %c0_17 = arith.constant 0 : index
    %15 = vector.load %arg13[%c1_16, %c0_17] : memref<18x72xf32, #tpu.memory_space<vmem>>, vector<16x72xf32>
    %c1_18 = arith.constant 1 : index
    %c0_19 = arith.constant 0 : index
    %c0_20 = arith.constant 0 : index
    %16 = vector.load %arg2[%c1_18, %c0_19, %c0_20] : memref<3x72x128xf32, #tpu.memory_space<vmem>>, vector<1x72x128xf32>
    %17 = vector.shape_cast %16 : vector<1x72x128xf32> to vector<72x128xf32>
    %cst_21 = arith.constant dense<0.000000e+00> : vector<16x128xf32>
    %18 = tpu.matmul %15, %17, %cst_21 {dimension_numbers = #tpu.dot_dimension_numbers<[1], [0], [0], [1], [0, 0, 1, 1], [], []>} : vector<16x72xf32>, vector<72x128xf32>, vector<16x128xf32> -> vector<16x128xf32>
    %19 = arith.addf %14, %18 : vector<16x128xf32>
    %c2 = arith.constant 2 : index
    %c0_22 = arith.constant 0 : index
    %20 = vector.load %arg13[%c2, %c0_22] : memref<18x72xf32, #tpu.memory_space<vmem>>, vector<16x72xf32>
    %c2_23 = arith.constant 2 : index
    %c0_24 = arith.constant 0 : index
    %c0_25 = arith.constant 0 : index
    %21 = vector.load %arg2[%c2_23, %c0_24, %c0_25] : memref<3x72x128xf32, #tpu.memory_space<vmem>>, vector<1x72x128xf32>
    %22 = vector.shape_cast %21 : vector<1x72x128xf32> to vector<72x128xf32>
    %cst_26 = arith.constant dense<0.000000e+00> : vector<16x128xf32>
    %23 = tpu.matmul %20, %22, %cst_26 {dimension_numbers = #tpu.dot_dimension_numbers<[1], [0], [0], [1], [0, 0, 1, 1], [], []>} : vector<16x72xf32>, vector<72x128xf32>, vector<16x128xf32> -> vector<16x128xf32>
    %24 = arith.addf %19, %23 : vector<16x128xf32>
    %c0_27 = arith.constant 0 : index
    %c0_28 = arith.constant 0 : index
    %25 = vector.load %arg5[%c0_27, %c0_28] : memref<1x128xf32, #tpu.memory_space<vmem>>, vector<1x128xf32>
    %26 = vector.broadcast %25 : vector<1x128xf32> to vector<16x128xf32>
    %27 = arith.addf %24, %26 : vector<16x128xf32>
    %cst_29 = arith.constant 0.000000e+00 : f32
    %28 = vector.broadcast %cst_29 : f32 to vector<16x128xf32>
    %29 = arith.maximumf %27, %28 : vector<16x128xf32>
    %c2_30 = arith.constant 2 : index
    %c16 = arith.constant 16 : index
    %30 = vector.load %arg14[%c2_30, %c16] : memref<20x160xf32, #tpu.memory_space<vmem>>, vector<16x128xf32>
    tpu.vector_store %arg14[%c2_30, %c16], %29 {strides = array<i32>} : memref<20x160xf32, #tpu.memory_space<vmem>>, vector<16x128xf32>,
    %31 = vector.extract_strided_slice %29 {offsets = [0, 0], sizes = [1, 128], strides = [1, 1]} : vector<16x128xf32> to vector<1x128xf32>
    %32 = vector.shape_cast %31 : vector<1x128xf32> to vector<1x128xf32>
    %33 = vector.broadcast %32 : vector<1x128xf32> to vector<2x128xf32>
    %c0_31 = arith.constant 0 : index
    %c16_32 = arith.constant 16 : index
    %34 = vector.load %arg14[%c0_31, %c16_32] : memref<20x160xf32, #tpu.memory_space<vmem>>, vector<2x128xf32>
    tpu.vector_store %arg14[%c0_31, %c16_32], %33 {strides = array<i32>} : memref<20x160xf32, #tpu.memory_space<vmem>>, vector<2x128xf32>,
    %35 = vector.extract_strided_slice %29 {offsets = [15, 0], sizes = [1, 128], strides = [1, 1]} : vector<16x128xf32> to vector<1x128xf32>
    %36 = vector.shape_cast %35 : vector<1x128xf32> to vector<1x128xf32>
    %37 = vector.broadcast %36 : vector<1x128xf32> to vector<2x128xf32>
    %c18 = arith.constant 18 : index
    %c16_33 = arith.constant 16 : index
    %38 = vector.load %arg14[%c18, %c16_33] : memref<20x160xf32, #tpu.memory_space<vmem>>, vector<2x128xf32>
    tpu.vector_store %arg14[%c18, %c16_33], %37 {strides = array<i32>} : memref<20x160xf32, #tpu.memory_space<vmem>>, vector<2x128xf32>,
    %c0_34 = arith.constant 0 : index
    %c16_35 = arith.constant 16 : index
    %39 = vector.load %arg14[%c0_34, %c16_35] : memref<20x160xf32, #tpu.memory_space<vmem>>, vector<20x8xf32>
    %c0_36 = arith.constant 0 : index
    %c136 = arith.constant 136 : index
    %40 = vector.load %arg14[%c0_36, %c136] : memref<20x160xf32, #tpu.memory_space<vmem>>, vector<20x8xf32>
    %c0_37 = arith.constant 0 : index
    %c0_38 = arith.constant 0 : index
    %41 = vector.load %arg14[%c0_37, %c0_38] : memref<20x160xf32, #tpu.memory_space<vmem>>, vector<20x8xf32>
    tpu.vector_store %arg14[%c0_37, %c0_38], %39 {strides = array<i32>} : memref<20x160xf32, #tpu.memory_space<vmem>>, vector<20x8xf32>,
    %c0_39 = arith.constant 0 : index
    %c144 = arith.constant 144 : index
    %42 = vector.load %arg14[%c0_39, %c144] : memref<20x160xf32, #tpu.memory_space<vmem>>, vector<20x8xf32>
    tpu.vector_store %arg14[%c0_39, %c144], %40 {strides = array<i32>} : memref<20x160xf32, #tpu.memory_space<vmem>>, vector<20x8xf32>,
    %c0_40 = arith.constant 0 : index
    %c8 = arith.constant 8 : index
    %43 = vector.load %arg14[%c0_40, %c8] : memref<20x160xf32, #tpu.memory_space<vmem>>, vector<20x8xf32>
    tpu.vector_store %arg14[%c0_40, %c8], %39 {strides = array<i32>} : memref<20x160xf32, #tpu.memory_space<vmem>>, vector<20x8xf32>,
    %c0_41 = arith.constant 0 : index
    %c152 = arith.constant 152 : index
    %44 = vector.load %arg14[%c0_41, %c152] : memref<20x160xf32, #tpu.memory_space<vmem>>, vector<20x8xf32>
    tpu.vector_store %arg14[%c0_41, %c152], %40 {strides = array<i32>} : memref<20x160xf32, #tpu.memory_space<vmem>>, vector<20x8xf32>,
    %c0_42 = arith.constant 0 : index
    %c0_43 = arith.constant 0 : index
    %45 = vector.load %arg14[%c0_42, %c0_43] : memref<20x160xf32, #tpu.memory_space<vmem>>, vector<16x160xf32>
    %c0_44 = arith.constant 0 : index
    %c0_45 = arith.constant 0 : index
    %c0_46 = arith.constant 0 : index
    %46 = vector.load %arg3[%c0_44, %c0_45, %c0_46] : memref<3x160x128xf32, #tpu.memory_space<vmem>>, vector<1x160x128xf32>
    %47 = vector.shape_cast %46 : vector<1x160x128xf32> to vector<160x128xf32>
    %cst_47 = arith.constant dense<0.000000e+00> : vector<16x128xf32>
    %48 = tpu.matmul %45, %47, %cst_47 {dimension_numbers = #tpu.dot_dimension_numbers<[1], [0], [0], [1], [0, 0, 1, 1], [], []>} : vector<16x160xf32>, vector<160x128xf32>, vector<16x128xf32> -> vector<16x128xf32>
    %c2_48 = arith.constant 2 : index
    %c0_49 = arith.constant 0 : index
    %49 = vector.load %arg14[%c2_48, %c0_49] : memref<20x160xf32, #tpu.memory_space<vmem>>, vector<16x160xf32>
    %c1_50 = arith.constant 1 : index
    %c0_51 = arith.constant 0 : index
    %c0_52 = arith.constant 0 : index
    %50 = vector.load %arg3[%c1_50, %c0_51, %c0_52] : memref<3x160x128xf32, #tpu.memory_space<vmem>>, vector<1x160x128xf32>
    %51 = vector.shape_cast %50 : vector<1x160x128xf32> to vector<160x128xf32>
    %cst_53 = arith.constant dense<0.000000e+00> : vector<16x128xf32>
    %52 = tpu.matmul %49, %51, %cst_53 {dimension_numbers = #tpu.dot_dimension_numbers<[1], [0], [0], [1], [0, 0, 1, 1], [], []>} : vector<16x160xf32>, vector<160x128xf32>, vector<16x128xf32> -> vector<16x128xf32>
    %53 = arith.addf %48, %52 : vector<16x128xf32>
    %c4_54 = arith.constant 4 : index
    %c0_55 = arith.constant 0 : index
    %54 = vector.load %arg14[%c4_54, %c0_55] : memref<20x160xf32, #tpu.memory_space<vmem>>, vector<16x160xf32>
    %c2_56 = arith.constant 2 : index
    %c0_57 = arith.constant 0 : index
    %c0_58 = arith.constant 0 : index
    %55 = vector.load %arg3[%c2_56, %c0_57, %c0_58] : memref<3x160x128xf32, #tpu.memory_space<vmem>>, vector<1x160x128xf32>
    %56 = vector.shape_cast %55 : vector<1x160x128xf32> to vector<160x128xf32>
    %cst_59 = arith.constant dense<0.000000e+00> : vector<16x128xf32>
    %57 = tpu.matmul %54, %56, %cst_59 {dimension_numbers = #tpu.dot_dimension_numbers<[1], [0], [0], [1], [0, 0, 1, 1], [], []>} : vector<16x160xf32>, vector<160x128xf32>, vector<16x128xf32> -> vector<16x128xf32>
    %58 = arith.addf %53, %57 : vector<16x128xf32>
    %c0_60 = arith.constant 0 : index
    %c0_61 = arith.constant 0 : index
    %59 = vector.load %arg6[%c0_60, %c0_61] : memref<1x128xf32, #tpu.memory_space<vmem>>, vector<1x128xf32>
    %60 = vector.broadcast %59 : vector<1x128xf32> to vector<16x128xf32>
    %61 = arith.addf %58, %60 : vector<16x128xf32>
    %cst_62 = arith.constant 0.000000e+00 : f32
    %62 = vector.broadcast %cst_62 : f32 to vector<16x128xf32>
    %63 = arith.maximumf %61, %62 : vector<16x128xf32>
    %c4_63 = arith.constant 4 : index
    %c32 = arith.constant 32 : index
    %64 = vector.load %arg15[%c4_63, %c32] : memref<24x192xf32, #tpu.memory_space<vmem>>, vector<16x128xf32>
    tpu.vector_store %arg15[%c4_63, %c32], %63 {strides = array<i32>} : memref<24x192xf32, #tpu.memory_space<vmem>>, vector<16x128xf32>,
    %65 = vector.extract_strided_slice %63 {offsets = [0, 0], sizes = [1, 128], strides = [1, 1]} : vector<16x128xf32> to vector<1x128xf32>
    %66 = vector.shape_cast %65 : vector<1x128xf32> to vector<1x128xf32>
    %67 = vector.broadcast %66 : vector<1x128xf32> to vector<4x128xf32>
    %c0_64 = arith.constant 0 : index
    %c32_65 = arith.constant 32 : index
    %68 = vector.load %arg15[%c0_64, %c32_65] : memref<24x192xf32, #tpu.memory_space<vmem>>, vector<4x128xf32>
    tpu.vector_store %arg15[%c0_64, %c32_65], %67 {strides = array<i32>} : memref<24x192xf32, #tpu.memory_space<vmem>>, vector<4x128xf32>,
    %69 = vector.extract_strided_slice %63 {offsets = [15, 0], sizes = [1, 128], strides = [1, 1]} : vector<16x128xf32> to vector<1x128xf32>
    %70 = vector.shape_cast %69 : vector<1x128xf32> to vector<1x128xf32>
    %71 = vector.broadcast %70 : vector<1x128xf32> to vector<4x128xf32>
    %c20 = arith.constant 20 : index
    %c32_66 = arith.constant 32 : index
    %72 = vector.load %arg15[%c20, %c32_66] : memref<24x192xf32, #tpu.memory_space<vmem>>, vector<4x128xf32>
    tpu.vector_store %arg15[%c20, %c32_66], %71 {strides = array<i32>} : memref<24x192xf32, #tpu.memory_space<vmem>>, vector<4x128xf32>,
    %c0_67 = arith.constant 0 : index
    %c32_68 = arith.constant 32 : index
    %73 = vector.load %arg15[%c0_67, %c32_68] : memref<24x192xf32, #tpu.memory_space<vmem>>, vector<24x8xf32>
    %c0_69 = arith.constant 0 : index
    %c152_70 = arith.constant 152 : index
    %74 = vector.load %arg15[%c0_69, %c152_70] : memref<24x192xf32, #tpu.memory_space<vmem>>, vector<24x8xf32>
    %c0_71 = arith.constant 0 : index
    %c0_72 = arith.constant 0 : index
    %75 = vector.load %arg15[%c0_71, %c0_72] : memref<24x192xf32, #tpu.memory_space<vmem>>, vector<24x8xf32>
    tpu.vector_store %arg15[%c0_71, %c0_72], %73 {strides = array<i32>} : memref<24x192xf32, #tpu.memory_space<vmem>>, vector<24x8xf32>,
    %c0_73 = arith.constant 0 : index
    %c160 = arith.constant 160 : index
    %76 = vector.load %arg15[%c0_73, %c160] : memref<24x192xf32, #tpu.memory_space<vmem>>, vector<24x8xf32>
    tpu.vector_store %arg15[%c0_73, %c160], %74 {strides = array<i32>} : memref<24x192xf32, #tpu.memory_space<vmem>>, vector<24x8xf32>,
    %c0_74 = arith.constant 0 : index
    %c8_75 = arith.constant 8 : index
    %77 = vector.load %arg15[%c0_74, %c8_75] : memref<24x192xf32, #tpu.memory_space<vmem>>, vector<24x8xf32>
    tpu.vector_store %arg15[%c0_74, %c8_75], %73 {strides = array<i32>} : memref<24x192xf32, #tpu.memory_space<vmem>>, vector<24x8xf32>,
    %c0_76 = arith.constant 0 : index
    %c168 = arith.constant 168 : index
    %78 = vector.load %arg15[%c0_76, %c168] : memref<24x192xf32, #tpu.memory_space<vmem>>, vector<24x8xf32>
    tpu.vector_store %arg15[%c0_76, %c168], %74 {strides = array<i32>} : memref<24x192xf32, #tpu.memory_space<vmem>>, vector<24x8xf32>,
    %c0_77 = arith.constant 0 : index
    %c16_78 = arith.constant 16 : index
    %79 = vector.load %arg15[%c0_77, %c16_78] : memref<24x192xf32, #tpu.memory_space<vmem>>, vector<24x8xf32>
    tpu.vector_store %arg15[%c0_77, %c16_78], %73 {strides = array<i32>} : memref<24x192xf32, #tpu.memory_space<vmem>>, vector<24x8xf32>,
    %c0_79 = arith.constant 0 : index
    %c176 = arith.constant 176 : index
    %80 = vector.load %arg15[%c0_79, %c176] : memref<24x192xf32, #tpu.memory_space<vmem>>, vector<24x8xf32>
    tpu.vector_store %arg15[%c0_79, %c176], %74 {strides = array<i32>} : memref<24x192xf32, #tpu.memory_space<vmem>>, vector<24x8xf32>,
    %c0_80 = arith.constant 0 : index
    %c24 = arith.constant 24 : index
    %81 = vector.load %arg15[%c0_80, %c24] : memref<24x192xf32, #tpu.memory_space<vmem>>, vector<24x8xf32>
    tpu.vector_store %arg15[%c0_80, %c24], %73 {strides = array<i32>} : memref<24x192xf32, #tpu.memory_space<vmem>>, vector<24x8xf32>,
    %c0_81 = arith.constant 0 : index
    %c184 = arith.constant 184 : index
    %82 = vector.load %arg15[%c0_81, %c184] : memref<24x192xf32, #tpu.memory_space<vmem>>, vector<24x8xf32>
    tpu.vector_store %arg15[%c0_81, %c184], %74 {strides = array<i32>} : memref<24x192xf32, #tpu.memory_space<vmem>>, vector<24x8xf32>,
    %c0_82 = arith.constant 0 : index
    %c0_83 = arith.constant 0 : index
    %83 = vector.load %arg15[%c0_82, %c0_83] : memref<24x192xf32, #tpu.memory_space<vmem>>, vector<16x192xf32>
    %c0_84 = arith.constant 0 : index
    %c0_85 = arith.constant 0 : index
    %c0_86 = arith.constant 0 : index
    %84 = vector.load %arg4[%c0_84, %c0_85, %c0_86] : memref<3x192x256xf32, #tpu.memory_space<vmem>>, vector<1x192x256xf32>
    %85 = vector.shape_cast %84 : vector<1x192x256xf32> to vector<192x256xf32>
    %cst_87 = arith.constant dense<0.000000e+00> : vector<16x256xf32>
    %86 = tpu.matmul %83, %85, %cst_87 {dimension_numbers = #tpu.dot_dimension_numbers<[1], [0], [0], [1], [0, 0, 1, 1], [], []>} : vector<16x192xf32>, vector<192x256xf32>, vector<16x256xf32> -> vector<16x256xf32>
    %c4_88 = arith.constant 4 : index
    %c0_89 = arith.constant 0 : index
    %87 = vector.load %arg15[%c4_88, %c0_89] : memref<24x192xf32, #tpu.memory_space<vmem>>, vector<16x192xf32>
    %c1_90 = arith.constant 1 : index
    %c0_91 = arith.constant 0 : index
    %c0_92 = arith.constant 0 : index
    %88 = vector.load %arg4[%c1_90, %c0_91, %c0_92] : memref<3x192x256xf32, #tpu.memory_space<vmem>>, vector<1x192x256xf32>
    %89 = vector.shape_cast %88 : vector<1x192x256xf32> to vector<192x256xf32>
    %cst_93 = arith.constant dense<0.000000e+00> : vector<16x256xf32>
    %90 = tpu.matmul %87, %89, %cst_93 {dimension_numbers = #tpu.dot_dimension_numbers<[1], [0], [0], [1], [0, 0, 1, 1], [], []>} : vector<16x192xf32>, vector<192x256xf32>, vector<16x256xf32> -> vector<16x256xf32>
    %91 = arith.addf %86, %90 : vector<16x256xf32>
    %c8_94 = arith.constant 8 : index
    %c0_95 = arith.constant 0 : index
    %92 = vector.load %arg15[%c8_94, %c0_95] : memref<24x192xf32, #tpu.memory_space<vmem>>, vector<16x192xf32>
    %c2_96 = arith.constant 2 : index
    %c0_97 = arith.constant 0 : index
    %c0_98 = arith.constant 0 : index
    %93 = vector.load %arg4[%c2_96, %c0_97, %c0_98] : memref<3x192x256xf32, #tpu.memory_space<vmem>>, vector<1x192x256xf32>
    %94 = vector.shape_cast %93 : vector<1x192x256xf32> to vector<192x256xf32>
    %cst_99 = arith.constant dense<0.000000e+00> : vector<16x256xf32>
    %95 = tpu.matmul %92, %94, %cst_99 {dimension_numbers = #tpu.dot_dimension_numbers<[1], [0], [0], [1], [0, 0, 1, 1], [], []>} : vector<16x192xf32>, vector<192x256xf32>, vector<16x256xf32> -> vector<16x256xf32>
    %96 = arith.addf %91, %95 : vector<16x256xf32>
    %c0_100 = arith.constant 0 : index
    %c0_101 = arith.constant 0 : index
    %97 = vector.load %arg7[%c0_100, %c0_101] : memref<1x256xf32, #tpu.memory_space<vmem>>, vector<1x256xf32>
    %98 = vector.broadcast %97 : vector<1x256xf32> to vector<16x256xf32>
    %99 = arith.addf %96, %98 : vector<16x256xf32>
    %cst_102 = arith.constant 0.000000e+00 : f32
    %100 = vector.broadcast %cst_102 : f32 to vector<16x256xf32>
    %101 = arith.maximumf %99, %100 : vector<16x256xf32>
    %c0_103 = arith.constant 0 : index
    %c0_104 = arith.constant 0 : index
    %102 = vector.load %arg8[%c0_103, %c0_104] : memref<128x64xf32, #tpu.memory_space<vmem>>, vector<128x64xf32>
    %cst_105 = arith.constant dense<0.000000e+00> : vector<16x64xf32>
    %103 = tpu.matmul %63, %102, %cst_105 {dimension_numbers = #tpu.dot_dimension_numbers<[1], [0], [0], [1], [0, 0, 1, 1], [], []>} : vector<16x128xf32>, vector<128x64xf32>, vector<16x64xf32> -> vector<16x64xf32>
    %c0_106 = arith.constant 0 : index
    %c0_107 = arith.constant 0 : index
    %104 = vector.load %arg9[%c0_106, %c0_107] : memref<256x64xf32, #tpu.memory_space<vmem>>, vector<256x64xf32>
    %cst_108 = arith.constant dense<0.000000e+00> : vector<16x64xf32>
    %105 = tpu.matmul %101, %104, %cst_108 {dimension_numbers = #tpu.dot_dimension_numbers<[1], [0], [0], [1], [0, 0, 1, 1], [], []>} : vector<16x256xf32>, vector<256x64xf32>, vector<16x64xf32> -> vector<16x64xf32>
    %106 = arith.addf %103, %105 : vector<16x64xf32>
    %c0_109 = arith.constant 0 : index
    %c0_110 = arith.constant 0 : index
    %107 = vector.load %arg10[%c0_109, %c0_110] : memref<1x64xf32, #tpu.memory_space<vmem>>, vector<1x64xf32>
    %108 = vector.broadcast %107 : vector<1x64xf32> to vector<16x64xf32>
    %109 = arith.addf %106, %108 : vector<16x64xf32>
    %c0_111 = arith.constant 0 : index
    %c0_112 = arith.constant 0 : index
    %110 = memref.load %arg11[%c0_111, %c0_112] : memref<1x1xf32, #tpu.memory_space<smem>>
    %cst_113 = arith.constant 0.000000e+00 : f32
    %111 = vector.broadcast %cst_113 : f32 to vector<16x64xf32>
    %112 = arith.cmpf oge, %109, %111 : vector<16x64xf32>
    %113 = vector.broadcast %110 : f32 to vector<16x64xf32>
    %114 = arith.mulf %113, %109 : vector<16x64xf32>
    %115 = arith.select %112, %109, %114 : vector<16x64xi1>, vector<16x64xf32>
    %c0_114 = arith.constant 0 : index
    %c0_115 = arith.constant 0 : index
    %c0_116 = arith.constant 0 : index
    %116 = vector.load %arg12[%c0_114, %c0_115, %c0_116] : memref<1x16x64xf32, #tpu.memory_space<vmem>>, vector<1x16x64xf32>
    %117 = vector.shape_cast %116 : vector<1x16x64xf32> to vector<16x64xf32>
    %118 = vector.shape_cast %115 : vector<16x64xf32> to vector<1x16x64xf32>
    tpu.vector_store %arg12[%c0_114, %c0_115, %c0_116], %118 {strides = array<i32>} : memref<1x16x64xf32, #tpu.memory_space<vmem>>, vector<1x16x64xf32>,
    return
  }
  func.func @transform_0(%arg0: i32) -> (i32, i32, i32) {
    %c0_i32 = arith.constant 0 : i32
    %c0_i32_0 = arith.constant 0 : i32
    %c0_i32_1 = arith.constant 0 : i32
    return %arg0, %c0_i32, %c0_i32_0 : i32, i32, i32
  }
  func.func @transform_1(%arg0: i32) -> (i32, i32, i32) {
    %c0_i32 = arith.constant 0 : i32
    %c0_i32_0 = arith.constant 0 : i32
    %c0_i32_1 = arith.constant 0 : i32
    %c0_i32_2 = arith.constant 0 : i32
    return %c0_i32, %c0_i32_0, %c0_i32_1 : i32, i32, i32
  }
  func.func @transform_2(%arg0: i32) -> (i32, i32, i32) {
    %c0_i32 = arith.constant 0 : i32
    %c0_i32_0 = arith.constant 0 : i32
    %c0_i32_1 = arith.constant 0 : i32
    %c0_i32_2 = arith.constant 0 : i32
    return %c0_i32, %c0_i32_0, %c0_i32_1 : i32, i32, i32
  }
  func.func @transform_3(%arg0: i32) -> (i32, i32, i32) {
    %c0_i32 = arith.constant 0 : i32
    %c0_i32_0 = arith.constant 0 : i32
    %c0_i32_1 = arith.constant 0 : i32
    %c0_i32_2 = arith.constant 0 : i32
    return %c0_i32, %c0_i32_0, %c0_i32_1 : i32, i32, i32
  }
  func.func @transform_4(%arg0: i32) -> (i32, i32) {
    %c0_i32 = arith.constant 0 : i32
    %c0_i32_0 = arith.constant 0 : i32
    %c0_i32_1 = arith.constant 0 : i32
    return %c0_i32, %c0_i32_0 : i32, i32
  }
  func.func @transform_5(%arg0: i32) -> (i32, i32) {
    %c0_i32 = arith.constant 0 : i32
    %c0_i32_0 = arith.constant 0 : i32
    %c0_i32_1 = arith.constant 0 : i32
    return %c0_i32, %c0_i32_0 : i32, i32
  }
  func.func @transform_6(%arg0: i32) -> (i32, i32) {
    %c0_i32 = arith.constant 0 : i32
    %c0_i32_0 = arith.constant 0 : i32
    %c0_i32_1 = arith.constant 0 : i32
    return %c0_i32, %c0_i32_0 : i32, i32
  }
  func.func @transform_7(%arg0: i32) -> (i32, i32) {
    %c0_i32 = arith.constant 0 : i32
    %c0_i32_0 = arith.constant 0 : i32
    %c0_i32_1 = arith.constant 0 : i32
    return %c0_i32, %c0_i32_0 : i32, i32
  }
  func.func @transform_8(%arg0: i32) -> (i32, i32) {
    %c0_i32 = arith.constant 0 : i32
    %c0_i32_0 = arith.constant 0 : i32
    %c0_i32_1 = arith.constant 0 : i32
    return %c0_i32, %c0_i32_0 : i32, i32
  }
  func.func @transform_9(%arg0: i32) -> (i32, i32) {
    %c0_i32 = arith.constant 0 : i32
    %c0_i32_0 = arith.constant 0 : i32
    %c0_i32_1 = arith.constant 0 : i32
    return %c0_i32, %c0_i32_0 : i32, i32
  }
  func.func @transform_10(%arg0: i32) -> (i32, i32) {
    %c0_i32 = arith.constant 0 : i32
    %c0_i32_0 = arith.constant 0 : i32
    %c0_i32_1 = arith.constant 0 : i32
    return %c0_i32, %c0_i32_0 : i32, i32
  }
  func.func @transform_11(%arg0: i32) -> (i32, i32, i32) {
    %c0_i32 = arith.constant 0 : i32
    %c0_i32_0 = arith.constant 0 : i32
    %c0_i32_1 = arith.constant 0 : i32
    return %arg0, %c0_i32, %c0_i32_0 : i32, i32, i32
  }
}

</mosaic_0001>

<bundles_post_ra>
// kernel: tpu_custom_call.1
= control target key start
LH: loop header
LB: loop body
LE: loop exit
PB: predicated region body
PF: predicated region fallthrough
CT: control target
= control target key end

     0   :  { %s3440_s0 = inlined_call_operand.vmem [shape: f32[2,16,64], index: 0, kind: input, shape index: {}]   ;;  %s3441_s1 = inlined_call_operand.hbm [shape: f32[3,72,128], index: 1, kind: input, shape index: {}]   ;;  %s3442_s2 = inlined_call_operand.vmem [shape: f32[3,160,128], index: 2, kind: input, shape index: {}]   ;;  %s3443_s3 = inlined_call_operand.hbm [shape: f32[3,192,256], index: 3, kind: input, shape index: {}]   ;;  %s3444_s4 = inlined_call_operand.vmem [shape: f32[1,128], index: 4, kind: input, shape index: {}]   ;;  %s3445_s5 = inlined_call_operand.vmem [shape: f32[1,128], index: 5, kind: input, shape index: {}]   ;;  %s3446_s6 = inlined_call_operand.vmem [shape: f32[1,256], index: 6, kind: input, shape index: {}]   ;;  %s3447_s7 = inlined_call_operand.vmem [shape: f32[128,64], index: 7, kind: input, shape index: {}]   ;;  %s3448_s8 = inlined_call_operand.vmem [shape: f32[256,64], index: 8, kind: input, shape index: {}]   ;;  %s3449_s9 = inlined_call_operand.vmem [shape: f32[1,64], index: 9, kind: input, shape index: {}]   ;;  %s3450_s10 = inlined_call_operand.<no memory space> [shape: f32[1,1], index: 10, kind: input, shape index: {}]   ;;  %s3451_s11 = inlined_call_operand.hbm [shape: f32[2,16,64], index: 11, kind: output, shape index: {}]  }
   0x1   :  { %16 = sst [smem:[#allocation5]] %s3450_s10 }
   0x2   :  { %17 = vsyncpa [#allocation7], 0 }
   0x3   :  { %18 = vsyncpa [#allocation10], 0 }
   0x4   :  { %19 = vsyncpa [#allocation8], 0 }
   0x5   :  { %21 = vsyncpa [#allocation8 + $0x1], 0  ;;  %s2698_s19 = smov 0   ;;  %s2700_s20 = smov 0  }
   0x6   :  { %s2702_s21 = smov 0   ;;  %s2704_s22 = smov 0  }
   0x7 LB: > { %3454 = sst [smem:[#allocation15_spill]] %s2610_s21  ;;  %s2719_s10 = sadd.s32 4294967295, %s2614_s22   ;;  %s2614_s22 = sphi %s2704_s22, %s3469_s22   ;;  %s2610_s21 = sphi %s2702_s21, %s3466_s21   ;;  %s2606_s20 = sphi %s2700_s20, %s3468_s20   ;;  %s2602_s19 = sphi %s2698_s19, %s3467_s19  }
   0x8   : > { %s2152_s23 = sadd.s32 4294967294, %s2614_s22   ;;  %s2723_s24 = sadd.s32 1, %s2614_s22  }
   0x9   : > { %s270_s25 = sadd.s32 1, %s2610_s21  ;;  %s267_s26 = ssub.s32 %s2614_s22, %s2723_s24 }
   0xa   : > { %p280_p0 = scmp.ne.s32.totalorder %s2610_s21, %s2606_s20  ;;  %p268_p1 = scmp.eq.s32.totalorder %s267_s26, 0 }
   0xb   : > { %p281_p2 = scmp.eq.s32.totalorder %s2719_s10, 1  ;;  %p286_p3 = scmp.ne.s32.totalorder %s2606_s20, %s2602_s19 }
   0xc   : > { %p287_p4 = scmp.eq.s32.totalorder %s2152_s23, 1  ;;  %p2153_p7 = scmp.ge.s32.totalorder %s2614_s22, 1 }
   0xd   : > { %s2734_s27 = scalar_select %p268_p1, %s2610_s21, %s270_s25  }
   0xe   : > { %p2736_p5 = por %p281_p2, %p280_p0  ;;  %p2740_p6 = por %p287_p4, %p286_p3 }
   0xf   : > { %3455 = sst [smem:[#allocation16_spill]] %s2734_s27  ;;  %p294_p8 = scmp.lt.s32.totalorder %s2614_s22, 3 }
  0x10   : > { %s3457_s29 = scalar_select %p2740_p6, 1, 0 }
  0x11   : > { %p3452_p9 = scmp.eq.s32.totalorder %s2719_s10, 0  ;;  %p2747_p10 = pnand %p2153_p7, %p294_p8 }
  0x12   : > { %s2616_s12 = smov [#allocation6]   ;;  %s2617_s15 = smov [#allocation9]  }
  0x13   : > { %s306_s13 = sshll.u32 %s2616_s12, 4  ;;  %p2428_p11 = pneg %p2747_p10  ;;  %s307_s13 = int_to_ptr.vmem [resolvable:$true] %s306_s13 }
  0x14   : > { %s322_s16 = sshll.u32 %s2617_s15, 4  ;;  %s2505_s17 = scalar_lea.vmem %s307_s13, 3456  ;;  %s323_s16 = int_to_ptr.vmem [resolvable:$true] %s322_s16 }
  0x15   : > { %p2755_p12 = pnand %p3452_p9, %p2428_p11  ;;  %p2506_p0 = scmp.ne.s32.totalorder %s307_s13, %s2505_s17 }
  0x16   : > { %p2513_p3 = scmp.lt.s32.totalorder %s307_s13, %s307_s13  ;;  %p2514_p4 = scmp.lt.s32.totalorder %s2505_s17, %s2505_s17 }
  0x17   : > { %p2496_p13 = pneg %p2755_p12 }
  0x18   : > { %p2515_p7 = por %p2514_p4, %p2513_p3 }
  0x19   : > { %p2508_p1 = pnand %p2506_p0, %p2496_p13 }
  0x1b   : > { %p2509_p2 = pneg %p2508_p1 }
  0x1d   : > { %p2516_p8 = pnand %p2515_p7, %p2509_p2 }
  0x1f   : > { %2519 = shalt.err (!%p2516_p8)
}
  0x20   : > { %s2618_s18 = smov 128   ;;  %s2619_s23 = smov 8  }
  0x21   : > { %2431 = dma.hbm_to_vmem [thread:$0]  (!%p2755_p12), %s3441_s1, 3456, %s307_s13, [#allocation7], %s2618_s18, %s2618_s18, %s2619_s23  }
  0x22   : > { %s2531_s12 = scalar_lea.vmem %s323_s16, 18432  ;;  %p2539_p9 = scmp.lt.s32.totalorder %s323_s16, %s323_s16 }
  0x23   : > { %p2532_p11 = scmp.ne.s32.totalorder %s323_s16, %s2531_s12  ;;  %p2540_p6 = scmp.lt.s32.totalorder %s2531_s12, %s2531_s12 }
  0x25   : > { %p2534_p0 = pnand %p2532_p11, %p2496_p13  ;;  %p2541_p3 = por %p2540_p6, %p2539_p9 }
  0x27   : > { %p2535_p1 = pneg %p2534_p0 }
  0x29   : > { %p2542_p2 = pnand %p2541_p3, %p2535_p1 }
  0x2b   : > { %2545 = shalt.err (!%p2542_p2)
}
  0x2c   : > { %s2620_s15 = smov 256   ;;  %s2621_s17 = smov 16  }
  0x2d   : > { %2434 = dma.hbm_to_vmem [thread:$0]  (!%p2755_p12), %s3443_s3, 18432, %s323_s16, [#allocation10], %s2620_s15, %s2620_s15, %s2621_s17  }
  0x2e   : > { %367 = sbr.rel (%p2747_p10) target bundleno = 1808 (0x710), region = 64  ;;  %p3460_p4 = scmp.eq.s32.totalorder (!%p2747_p10), %s2719_s10, 0 }
  0x33   : > { %2589 = dma.done.wait (%p3460_p4), [#allocation7], 3456   ;;  %p3461_p13 = pmov %p3460_p4 }
  0x34   : > { %p3462_p6 = pmov %p3460_p4 }
  0x35   : > { %2591 = vsyncadd (%p3461_p13), [#allocation7], 4294963840 }
  0x36   : > { %2593 = dma.done.wait (%p3462_p6), [#allocation10], 18432   ;;  %p3463_p9 = pmov %p3460_p4 }
  0x37   : > { %p411_p7 = scmp.lt.s32.totalorder %s2719_s10, 1  ;;  %s2622_s16 = smov 4   ;;  %v489_v2 = vld [vmem:[#allocation6 + $0x88] sm:$0xff]  ;;  %v664_v3 = vld [vmem:[#allocation6 + $0xd0] sm:$0xff]  ;;  %v488_v4 = vld [vmem:[#allocation6 + $0x80] sm:$0xff]  ;;  %vm426_vm0 = vcmask 556064   ;;  %v786_v58 = vlaneseq }
  0x38   : > { %2595 = vsyncadd (%p3463_p9), [#allocation10], 4294948864  ;;  %2320 = vmatprep.subr.mxu1 %v489_v2  ;;  %2362 = vmatprep.subr.mxu0 %v664_v3  ;;  %vm429_vm1 = vcmask 548896   ;;  %v663_v5 = vld [vmem:[#allocation6 + $0xc8] sm:$0xff]  ;;  %v487_v7 = vld [vmem:[#allocation6 + $0x78] sm:$0xff]  ;;  %vm431_vm2 = vcmask 556071  }
  0x39   : > { %s412_s21 = scalar_select %p411_p7, %s2719_s10, 1  ;;  %2321 = vmatpush3.msra.mxu1 %v489_v2  ;;  %2363 = vmatpush3.msra.mxu0 %v664_v3  ;;  %v662_v8 = vld [vmem:[#allocation6 + $0xc0] sm:$0xff]  ;;  %v486_v9 = vld [vmem:[#allocation6 + $0x70] sm:$0xff]  ;;  %v661_v10 = vld [vmem:[#allocation6 + $0xb8] sm:$0xff]  ;;  %vm448_vm3 = vcmask 31744   ;;  %vm451_vm4 = vcmask 25600  }
  0x3a   : > { %2322 = vmatprep.subr.mxu1 %v488_v4  ;;  %2364 = vmatprep.subr.mxu0 %v663_v5  ;;  %v485_v12 = vld [vmem:[#allocation6 + $0x68] sm:$0xff]  ;;  %v660_v13 = vld [vmem:[#allocation6 + $0xb0] sm:$0xff]  ;;  %v484_v14 = vld [vmem:[#allocation6 + $0x60] sm:$0xff]  ;;  %s2623_s18 = smov 124   ;;  %vm462_vm5 = vcmask 589344   ;;  %vm465_vm6 = vcmask 583200  }
  0x3b   : > { %s2229_s27 = sshll.u32 %s412_s21, 4  ;;  %2323 = vmatpush3.msra.mxu1 %v488_v4  ;;  %2365 = vmatpush3.msra.mxu0 %v663_v5  ;;  %v659_v15 = vld [vmem:[#allocation6 + $0xa8] sm:$0xff]  ;;  %v483_v17 = vld [vmem:[#allocation6 + $0x58] sm:$0xff]  ;;  %v658_v18 = vld [vmem:[#allocation6 + $0xa0] sm:$0xff]  ;;  %vm490_vm7 = vcmask 588800   ;;  %v2808_v62 = vshrl.u32 %v786_v58, 7 }
  0x3c   : > { %s415_s14 = scalar_lea.vmem %s3440_s0, %s2229_s27  ;;  %2324 = vmatprep.subr.mxu1 %v487_v7  ;;  %2366 = vmatprep.subr.mxu0 %v662_v8  ;;  %v482_v19 = vld [vmem:[#allocation6 + $0x50] sm:$0xff]  ;;  %v657_v20 = vld [vmem:[#allocation6 + $0x98] sm:$0xff]  ;;  %v481_v23 = vld [vmem:[#allocation6 + $0x48] sm:$0xff]  ;;  %vm761_vm8 = vcmask 1041408   ;;  %s2624_s26 = smov 16   ;;  %vm774_vm9 = vcmask 1047682  }
  0x3d   : > { %v416_v0 = vld [vmem:[%s415_s14] sm:$0xff]  ;;  %v417_v1 = vld [vmem:[%s415_s14 + $0x8] sm:$0xff]  ;;  %2325 = vmatpush3.msra.mxu1 %v487_v7  ;;  %2367 = vmatpush3.msra.mxu0 %v662_v8  ;;  %v477_v25 = vld [vmem:[#allocation6 + $0x40] sm:$0xff]  ;;  %v798_v4 = vsub.s32 7, %v2808_v62  ;;  %v2625_v8 = vmov 0.0   ;;  %vm776_vm10 = vcmask 130050  }
  0x3e   : > { %420 = vrot.lane.b32.xlu0 %v416_v0, %s2622_s16  ;;  %2326 = vmatprep.subr.mxu1 %v486_v9  ;;  %v656_v24 = vld [vmem:[#allocation6 + $0x90] sm:$0xff]  ;;  %v476_v36 = vld [vmem:[#allocation6 + $0x38] sm:$0xff]  ;;  %v474_v39 = vld [vmem:[#allocation6 + $0x28] sm:$0xff]  ;;  %vm778_vm11 = vcmask 1047680   ;;  %vm780_vm12 = vcmask 130048   ;;  %vm782_vm13 = vcmask 1041536  }
  0x3f   : > { %2327 = vmatpush3.msra.mxu1 %v486_v9  ;;  %2368 = vmatprep.subr.mxu0 %v661_v10  ;;  %v475_v38 = vld [vmem:[#allocation6 + $0x30] sm:$0xff]  ;;  %v473_v40 = vld [vmem:[#allocation6 + $0x20] sm:$0xff]  ;;  %v472_v41 = vld [vmem:[#allocation6 + $0x18] sm:$0xff]  ;;  %vm784_vm14 = vcmask 123904   ;;  %vm804_vm15 = vcmask 1043586   ;;  %s2626_s12 = smov 8  }
  0x40   : > { %2328 = vmatprep.subr.mxu1 %v485_v12  ;;  %2369 = vmatpush3.msra.mxu0 %v661_v10  ;;  %v471_v42 = vld [vmem:[#allocation6 + $0x10] sm:$0xff]  ;;  %v470_v43 = vld [vmem:[#allocation6 + $0x8] sm:$0xff]  ;;  %v469_v44 = vld [vmem:[#allocation6] sm:$0xff]  ;;  %s2628_s15 = smov 120   ;;  %s2630_s23 = smov 96  }
  0x41   : > { %2329 = vmatpush3.msra.mxu1 %v485_v12  ;;  %2370 = vmatprep.subr.mxu0 %v660_v13  ;;  %v2169_v51 = vld [vmem:[%s3444_s4] ss:$0 sm:$0xff]  ;;  %v2185_v7 = vld [vmem:[%s3442_s2 + $0x118] sm:$0xff]  ;;  %v894_v9 = vld [vmem:[%s3442_s2 + $0x70] sm:$0xff]  ;;  %s2631_s25 = smov 104   ;;  %s2632_s17 = smov 24  }
  0x42   : > { %422 = vrot.lane.b32.xlu0 %v417_v1, %s2622_s16  ;;  %2330 = vmatprep.subr.mxu1 %v484_v14  ;;  %v2811_v1 = vsub.s32 0, %v2808_v62  ;;  %v2184_v10 = vld [vmem:[%s3442_s2 + $0x110] sm:$0xff]  ;;  %v2183_v12 = vld [vmem:[%s3442_s2 + $0x108] sm:$0xff]  ;;  %s408_s21 = sand.u32 1, %s2606_s20   ;;  %s2230_s14 = sshll.u32 %s2719_s10, 8 }
  0x43   : > { %2371 = vmatpush3.msra.mxu0 %v660_v13  ;;  %2331 = vmatpush3.msra.mxu1 %v484_v14  ;;  %v892_v13 = vld [vmem:[%s3442_s2 + $0x60] sm:$0xff]  ;;  %s2160_s30 = sshll.u32 %s408_s21, 4  ;;  %s3399_s10 = scalar_lea.sflag [#allocation8], %s408_s21 }
  0x44   : > { %2372 = vmatprep.subr.mxu0 %v659_v15  ;;  %2332 = vmatprep.subr.mxu1 %v483_v17  ;;  %v2182_v14 = vld [vmem:[%s3442_s2 + $0x100] sm:$0xff] }
  0x45   : > { %2373 = vmatpush3.msra.mxu0 %v659_v15  ;;  %2333 = vmatpush3.msra.mxu1 %v483_v17  ;;  %v891_v15 = vld [vmem:[%s3442_s2 + $0x58] sm:$0xff]  ;;  %v890_v17 = vld [vmem:[%s3442_s2 + $0x50] sm:$0xff] }
  0x46   : > { %2374 = vmatprep.subr.mxu0 %v658_v18  ;;  %2334 = vmatprep.subr.mxu1 %v482_v19 }
  0x47   : > { %2375 = vmatpush3.msra.mxu0 %v658_v18  ;;  %2335 = vmatpush3.msra.mxu1 %v482_v19  ;;  %v2180_v18 = vld [vmem:[%s3442_s2 + $0xf0] sm:$0xff]  ;;  %v889_v19 = vld [vmem:[%s3442_s2 + $0x48] sm:$0xff] }
  0x48   : > { %2376 = vmatprep.subr.mxu0 %v657_v20  ;;  %2336 = vmatprep.subr.mxu1 %v481_v23 }
  0x49   : > { %2377 = vmatpush3.msra.mxu0 %v657_v20  ;;  %2337 = vmatpush3.msra.mxu1 %v481_v23  ;;  %v2179_v20 = vld [vmem:[%s3442_s2 + $0xe8] sm:$0xff]  ;;  %v887_v23 = vld [vmem:[%s3442_s2 + $0x38] sm:$0xff] }
  0x4a   : > { %2378 = vmatprep.subr.mxu0 %v656_v24  ;;  %2341 = vmatprep.subr.mxu1 %v477_v25 }
  0x4b   : > { %2379 = vmatpush3.msra.mxu0 %v656_v24  ;;  %v2177_v24 = vld [vmem:[%s3442_s2 + $0xd8] sm:$0xff] }
  0x4c   : > { %1029 = vmatprep.subr.mxu0 %v2625_v8 }
  0xb0   : > { %v421_v6 = vpop.permute.xlu0 %420 }
  0xb1   : > { %427 = vst.msk [vmem:[#allocation2 + $0x1] sm:$0xff] %vm426_vm0, %v421_v6 }
  0xb2   : > { %430 = vst.msk [vmem:[#allocation2] sm:$0x1] %vm429_vm1, %v421_v6  ;;  %v895_v6 = vld [vmem:[%s3442_s2 + $0x78] sm:$0xff]  ;;  %vm843_vm1 = vcmask 195712  }
  0xb4   : > { %v423_v11 = vpop.permute.xlu0 %422 }
  0xb5   : > { %428 = vst.msk [vmem:[#allocation2 + $0x9] sm:$0xff] %vm426_vm0, %v423_v11  ;;  %vm806_vm0 = vcmask 125954  }
  0xb6   : > { %432 = vst.msk [vmem:[#allocation2 + $0xa] sm:$0x80] %vm431_vm2, %v423_v11  ;;  %v893_v11 = vld [vmem:[%s3442_s2 + $0x68] sm:$0xff]  ;;  %vm826_vm2 = vcmask 64512  }
  0xb9   : > { %v433_v16 = vld [vmem:[#allocation2] sm:$0xff] }
  0xba   : > { %439 = vrot.lane.b32.xlu1 %v433_v16, %s2623_s18 }
  0xbc   : > { %v434_v22 = vld [vmem:[#allocation2 + $0x8] sm:$0xff] }
  0xbd   : > { %v435_v21 = vld [vmem:[#allocation2 + $0x10] sm:$0x3] }
  0xbe   : > { %443 = vrot.lane.b32.xlu0 %v435_v21, %s2623_s18  ;;  %441 = vrot.lane.b32.xlu1 %v434_v22, %s2623_s18  ;;  %s2627_s18 = smov 112  }
  0xc2   : > { %455 = vrot.lane.b32.xlu0 %v434_v22, %s2622_s16  ;;  %453 = vrot.lane.b32.xlu1 %v433_v16, %s2622_s16  ;;  %v2181_v16 = vld [vmem:[%s3442_s2 + $0xf8] sm:$0xff]  ;;  %v2178_v22 = vld [vmem:[%s3442_s2 + $0xe0] sm:$0xff] }
  0xc6   : > { %457 = vrot.lane.b32.xlu1 %v435_v21, %s2622_s16  ;;  %v888_v21 = vld [vmem:[%s3442_s2 + $0x40] sm:$0xff]  ;;  %s2629_s16 = smov 32  }
 0x12c   : > { %v440_v26 = vpop.permute.xlu1 %439 }
 0x12d   : > { %449 = vst.msk [vmem:[#allocation2] sm:$0xff] %vm448_vm3, %v440_v26 }
 0x130   : > { %v444_v27 = vpop.permute.xlu0 %443  ;;  %v442_v28 = vpop.permute.xlu1 %441 }
 0x131   : > { %452 = vst.msk [vmem:[#allocation2 + $0x10] sm:$0x3] %vm451_vm4, %v444_v27  ;;  %v2176_v27 = vld [vmem:[%s3442_s2 + $0xd0] sm:$0xff]  ;;  %vm857_vm4 = vcmask 130112  }
 0x132   : > { %450 = vst.msk [vmem:[#allocation2 + $0x8] sm:$0xff] %vm448_vm3, %v442_v28  ;;  %v885_v28 = vld [vmem:[%s3442_s2 + $0x28] sm:$0xff]  ;;  %vm871_vm3 = vcmask 261312  }
 0x134   : > { %v456_v29 = vpop.permute.xlu0 %455  ;;  %v454_v30 = vpop.permute.xlu1 %453 }
 0x135   : > { %464 = vst.msk [vmem:[#allocation2 + $0x8] sm:$0xff] %vm462_vm5, %v456_v29  ;;  %463 = vst.msk [vmem:[#allocation2] sm:$0xff] %vm462_vm5, %v454_v30  ;;  %v2175_v30 = vld [vmem:[%s3442_s2 + $0xc8] sm:$0xff]  ;;  %vm829_vm5 = vcmask 60416  }
 0x138   : > { %v458_v31 = vpop.permute.xlu1 %457 }
 0x139   : > { %466 = vst.msk [vmem:[#allocation2 + $0x10] sm:$0x3] %vm465_vm6, %v458_v31  ;;  %v884_v31 = vld [vmem:[%s3442_s2 + $0x20] sm:$0xff]  ;;  %vm846_vm6 = vcmask 191616  }
 0x13c   : > { %v478_v32 = vld [vmem:[#allocation2 + $0x1] sm:$0xff] }
 0x13d   : > { %v653_v33 = vld [vmem:[#allocation2 + $0x2] sm:$0xff]  ;;  %2338 = vmatprep.mubr.msk.f32.mxu1 %vm490_vm7, %v478_v32 }
 0x13e   : > { %2380 = vmatprep.mubr.msk.f32.mxu0 %vm490_vm7, %v653_v33  ;;  %v467_v37 = vld [vmem:[#allocation2] sm:$0xff]  ;;  %v468_v45 = vld [vmem:[#allocation2 + $0x8] sm:$0xff] }
 0x13f   : > { %v2174_v33 = vld [vmem:[%s3442_s2 + $0xc0] sm:$0xff] }
 0x140   : > { %v479_v34 = vld [vmem:[#allocation2 + $0x9] sm:$0xff] }
 0x141   : > { %v654_v35 = vld [vmem:[#allocation2 + $0xa] sm:$0xff]  ;;  %2339 = vmatmul.mubr.msk.f32.vlgmr.msra.gmra.mxu1 %vm490_vm7, %v479_v34  ;;  %v883_v34 = vld [vmem:[%s3442_s2 + $0x18] sm:$0xff] }
 0x142   : > { %2381 = vmatmul.mubr.msk.f32.vlgmr.msra.gmra.mxu0 %vm490_vm7, %v654_v35  ;;  %2342 = vmatpush3.msra.mxu1 %v477_v25  ;;  %v886_v25 = vld [vmem:[%s3442_s2 + $0x30] sm:$0xff] }
 0x143   : > { %2359 = vmatprep.mubr.msk.f32.mxu1 %vm490_vm7, %v467_v37  ;;  %2343 = vmatprep.subr.mxu1 %v476_v36  ;;  %v882_v37 = vld [vmem:[%s3442_s2 + $0x10] sm:$0xff] }
 0x144   : > { %2344 = vmatpush3.msra.mxu1 %v476_v36  ;;  %1030 = vmatpush1.msra.mxu0 %v895_v6  ;;  %v2173_v36 = vld [vmem:[%s3442_s2 + $0xb8] sm:$0xff] }
 0x145   : > { %2345 = vmatprep.subr.mxu1 %v475_v38  ;;  %1031 = vmatprep.subr.mxu0 %v2625_v8 }
 0x146   : > { %2346 = vmatpush3.msra.mxu1 %v475_v38  ;;  %1032 = vmatpush1.msra.mxu0 %v894_v9 }
 0x147   : > { %2347 = vmatprep.subr.mxu1 %v474_v39  ;;  %1033 = vmatprep.subr.mxu0 %v2625_v8 }
 0x148   : > { %2348 = vmatpush3.msra.mxu1 %v474_v39  ;;  %1034 = vmatpush1.msra.mxu0 %v893_v11  ;;  %v2172_v39 = vld [vmem:[%s3442_s2 + $0xb0] sm:$0xff] }
 0x149   : > { %2349 = vmatprep.subr.mxu1 %v473_v40  ;;  %1035 = vmatprep.subr.mxu0 %v2625_v8 }
 0x14a   : > { %2350 = vmatpush3.msra.mxu1 %v473_v40  ;;  %1036 = vmatpush1.msra.mxu0 %v892_v13  ;;  %v881_v40 = vld [vmem:[%s3442_s2 + $0x8] sm:$0xff] }
 0x14b   : > { %2351 = vmatprep.subr.mxu1 %v472_v41  ;;  %1037 = vmatprep.subr.mxu0 %v2625_v8 }
 0x14c   : > { %2352 = vmatpush3.msra.mxu1 %v472_v41  ;;  %1038 = vmatpush1.msra.mxu0 %v891_v15 }
 0x14d   : > { %2353 = vmatprep.subr.mxu1 %v471_v42  ;;  %1039 = vmatprep.subr.mxu0 %v2625_v8 }
 0x14e   : > { %2354 = vmatpush3.msra.mxu1 %v471_v42  ;;  %1040 = vmatpush1.msra.mxu0 %v890_v17  ;;  %v2171_v42 = vld [vmem:[%s3442_s2 + $0xa8] sm:$0xff] }
 0x14f   : > { %2355 = vmatprep.subr.mxu1 %v470_v43  ;;  %1041 = vmatprep.subr.mxu0 %v2625_v8 }
 0x150   : > { %2356 = vmatpush3.msra.mxu1 %v470_v43  ;;  %1042 = vmatpush1.msra.mxu0 %v889_v19  ;;  %v880_v43 = vld [vmem:[%s3442_s2] sm:$0xff] }
 0x151   : > { %2357 = vmatprep.subr.mxu1 %v469_v44  ;;  %1043 = vmatprep.subr.mxu0 %v2625_v8 }
 0x152   : > { %2358 = vmatpush3.msra.mxu1 %v469_v44  ;;  %1044 = vmatpush1.msra.mxu0 %v888_v21  ;;  %v2209_v21 = vld [vmem:[%s3442_s2 + $0x1b8] sm:$0xff] }
 0x153   : > { %2360 = vmatmul.mubr.msk.f32.vlgmr.msra.gmra.mxu1 %vm490_vm7, %v468_v45  ;;  %949 = vmatprep.subr.mxu1 %v2625_v8  ;;  %v2170_v45 = vld [vmem:[%s3442_s2 + $0xa0] sm:$0xff]  ;;  %vm944_vm7 = vcmask 261120  }
 0x154   : > { %950 = vmatpush1.msra.mxu1 %v2185_v7  ;;  %1045 = vmatprep.subr.mxu0 %v2625_v8 }
 0x155   : > { %951 = vmatprep.subr.mxu1 %v2625_v8  ;;  %1046 = vmatpush1.msra.mxu0 %v887_v23  ;;  %v2208_v23 = vld [vmem:[%s3442_s2 + $0x1b0] sm:$0xff] }
 0x156   : > { %952 = vmatpush1.msra.mxu1 %v2184_v10  ;;  %1047 = vmatprep.subr.mxu0 %v2625_v8 }
 0x157   : > { %953 = vmatprep.subr.mxu1 %v2625_v8  ;;  %1048 = vmatpush1.msra.mxu0 %v886_v25 }
 0x158   : > { %954 = vmatpush1.msra.mxu1 %v2183_v12  ;;  %1049 = vmatprep.subr.mxu0 %v2625_v8 }
 0x159   : > { %955 = vmatprep.subr.mxu1 %v2625_v8  ;;  %1050 = vmatpush1.msra.mxu0 %v885_v28 }
 0x15a   : > { %956 = vmatpush1.msra.mxu1 %v2182_v14  ;;  %1051 = vmatprep.subr.mxu0 %v2625_v8 }
 0x15b   : > { %957 = vmatprep.subr.mxu1 %v2625_v8  ;;  %1052 = vmatpush1.msra.mxu0 %v884_v31  ;;  %v2205_v31 = vld [vmem:[%s3442_s2 + $0x198] sm:$0xff] }
 0x15c   : > { %958 = vmatpush1.msra.mxu1 %v2181_v16  ;;  %1053 = vmatprep.subr.mxu0 %v2625_v8 }
 0x15d   : > { %959 = vmatprep.subr.mxu1 %v2625_v8  ;;  %1054 = vmatpush1.msra.mxu0 %v883_v34  ;;  %v2204_v34 = vld [vmem:[%s3442_s2 + $0x190] sm:$0xff] }
 0x15e   : > { %960 = vmatpush1.msra.mxu1 %v2180_v18  ;;  %1055 = vmatprep.subr.mxu0 %v2625_v8 }
 0x15f   : > { %961 = vmatprep.subr.mxu1 %v2625_v8  ;;  %1056 = vmatpush1.msra.mxu0 %v882_v37 }
 0x160   : > { %962 = vmatpush1.msra.mxu1 %v2179_v20  ;;  %1057 = vmatprep.subr.mxu0 %v2625_v8 }
 0x161   : > { %963 = vmatprep.subr.mxu1 %v2625_v8  ;;  %1058 = vmatpush1.msra.mxu0 %v881_v40  ;;  %v2201_v40 = vld [vmem:[%s3442_s2 + $0x178] sm:$0xff] }
 0x162   : > { %964 = vmatpush1.msra.mxu1 %v2178_v22  ;;  %1059 = vmatprep.subr.mxu0 %v2625_v8 }
 0x163   : > { %965 = vmatprep.subr.mxu1 %v2625_v8  ;;  %1060 = vmatpush1.msra.mxu0 %v880_v43  ;;  %v2198_v43 = vld [vmem:[%s3442_s2 + $0x160] sm:$0xff] }
 0x164   : > { %966 = vmatpush1.msra.mxu1 %v2177_v24  ;;  %1085 = vmatprep.subr.mxu0 %v2625_v8  ;;  %v2207_v24 = vld [vmem:[%s3442_s2 + $0x1a8] sm:$0xff] }
 0x165   : > { %967 = vmatprep.subr.mxu1 %v2625_v8 }
 0x166   : > { %968 = vmatpush1.msra.mxu1 %v2176_v27  ;;  %v2206_v27 = vld [vmem:[%s3442_s2 + $0x1a0] sm:$0xff] }
 0x167   : > { %969 = vmatprep.subr.mxu1 %v2625_v8 }
 0x168   : > { %970 = vmatpush1.msra.mxu1 %v2175_v30 }
 0x169   : > { %971 = vmatprep.subr.mxu1 %v2625_v8 }
 0x16a   : > { %972 = vmatpush1.msra.mxu1 %v2174_v33 }
 0x16b   : > { %973 = vmatprep.subr.mxu1 %v2625_v8 }
 0x16c   : > { %974 = vmatpush1.msra.mxu1 %v2173_v36 }
 0x16d   : > { %975 = vmatprep.subr.mxu1 %v2625_v8 }
 0x16e   : > { %976 = vmatpush1.msra.mxu1 %v2172_v39  ;;  %v2202_v39 = vld [vmem:[%s3442_s2 + $0x180] sm:$0xff] }
 0x16f   : > { %977 = vmatprep.subr.mxu1 %v2625_v8 }
 0x170   : > { %978 = vmatpush1.msra.mxu1 %v2171_v42  ;;  %v2199_v42 = vld [vmem:[%s3442_s2 + $0x168] sm:$0xff] }
 0x171   : > { %979 = vmatprep.subr.mxu1 %v2625_v8 }
 0x172   : > { %980 = vmatpush1.msra.mxu1 %v2170_v45  ;;  %v2196_v45 = vld [vmem:[%s3442_s2 + $0x150] sm:$0xff] }
 0x173   : > { %1005 = vmatprep.subr.mxu1 %v2625_v8 }
 0x201   : > { %v2340_v46 = vpop.f32.mrf.mxu1 }
 0x202   : > { %v2382_v48 = vpop.f32.mrf.mxu0 }
 0x203   : > { %v563_v47 = vpop.f32.mrf.mxu1 }
 0x204   : > { %v737_v55 = vpop.f32.mrf.mxu0 }
 0x213   : > { %v2361_v49 = vpop.f32.mrf.mxu1 }
 0x214   : > { %v650_v50 = vadd.f32 %v2361_v49, %v2340_v46  ;;  %v898_v49 = vld [vmem:[%s3442_s2 + $0x90] sm:$0xff] }
 0x215   : > { %v644_v52 = vpop.f32.mrf.mxu1 }
 0x216   : > { %v747_v53 = vadd.f32 %v2382_v48, %v650_v50  ;;  %v645_v54 = vadd.f32 %v644_v52, %v563_v47  ;;  %v899_v47 = vld [vmem:[%s3442_s2 + $0x98] sm:$0xff]  ;;  %v897_v52 = vld [vmem:[%s3442_s2 + $0x88] sm:$0xff] }
 0x217   : > { %v2189_v48 = vld [vmem:[%s3442_s2 + $0x138] sm:$0xff]  ;;  %1086 = vmatpush2.msra.mxu0 %v899_v47  ;;  %v2194_v47 = vld [vmem:[%s3442_s2 + $0x140] sm:$0xff] }
 0x218   : > { %v756_v56 = vadd.f32 %v2169_v51, %v747_v53  ;;  %v746_v57 = vadd.f32 %v737_v55, %v645_v54  ;;  %1087 = vmatprep.subr.mxu0 %v2625_v8  ;;  %1006 = vmatpush2.msra.mxu1 %v2189_v48  ;;  %v2187_v53 = vld [vmem:[%s3442_s2 + $0x128] sm:$0xff]  ;;  %v896_v54 = vld [vmem:[%s3442_s2 + $0x80] sm:$0xff]  ;;  %v2213_v48 = vld [vmem:[%s3442_s2 + $0x1d8] sm:$0xff] }
 0x219   : > { %1088 = vmatpush2.msra.mxu0 %v898_v49  ;;  %1007 = vmatprep.subr.mxu1 %v2625_v8  ;;  %v2186_v55 = vld [vmem:[%s3442_s2 + $0x120] sm:$0xff]  ;;  %v2212_v49 = vld [vmem:[%s3442_s2 + $0x1d0] sm:$0xff] }
 0x21a   : > { %v758_v59 = vmax.f32 %v756_v56, 0.0  ;;  %v755_v60 = vadd.f32 %v2169_v51, %v746_v57  ;;  %v2188_v51 = vld [vmem:[%s3442_s2 + $0x130] sm:$0xff]  ;;  %1089 = vmatprep.subr.mxu0 %v2625_v8 }
 0x21b   : > { %1008 = vmatpush2.msra.mxu1 %v2188_v51  ;;  %1090 = vmatpush2.msra.mxu0 %v897_v52  ;;  %v2211_v52 = vld [vmem:[%s3442_s2 + $0x1c8] sm:$0xff] }
 0x21c   : > { %v757_v61 = vmax.f32 %v755_v60, 0.0  ;;  %v763_v0 = vrot.slane %v758_v59, 6  ;;  %v799_v5 = vrot.slane %v758_v59, %v798_v4  ;;  %1009 = vmatprep.subr.mxu1 %v2625_v8  ;;  %1091 = vmatprep.subr.mxu0 %v2625_v8 }
 0x21d   : > { %1010 = vmatpush2.msra.mxu1 %v2187_v53  ;;  %1092 = vmatpush2.msra.mxu0 %v896_v54  ;;  %v2210_v54 = vld [vmem:[%s3442_s2 + $0x1c0] sm:$0xff] }
 0x21e   : > { %v762_v63 = vrot.slane %v757_v61, 6  ;;  %v789_v3 = vrot.slane %v757_v61, %v2811_v1  ;;  %1011 = vmatprep.subr.mxu1 %v2625_v8 }
 0x21f   : > { %1012 = vmatpush2.msra.mxu1 %v2186_v55 }
 0x220   : > { %765 = vrot.lane.b32.xlu0 %v762_v63, %s2624_s26  ;;  %v764_v2 = vsel %vm761_vm8, %v762_v63, %v763_v0  ;;  %1150 = vmatprep.subr.mxu1 %v2625_v8  ;;  %vm860_vm8 = vcmask 126016  }
 0x221   : > { %767 = vrot.lane.b32.xlu1 %v764_v2, %s2624_s26 }
 0x224   : > { %791 = vrot.lane.b32.xlu0 %v789_v3, %s2624_s26 }
 0x225   : > { %769 = vrot.lane.b32.xlu1 %v763_v0, %s2624_s26 }
 0x228   : > { %801 = vrot.lane.b32.xlu0 %v799_v5, %s2624_s26 }
 0x292   : > { %v766_v26 = vpop.permute.xlu0 %765 }
 0x293   : > { %775 = vst.msk [vmem:[#allocation3] sm:$0xfc] %vm774_vm9, %v766_v26  ;;  %v768_v29 = vpop.permute.xlu1 %767  ;;  %vm931_vm9 = vcmask 1045504  }
 0x294   : > { %777 = vst.msk [vmem:[#allocation3 + $0x8] sm:$0xfc] %vm776_vm10, %v766_v26  ;;  %vm874_vm10 = vcmask 257216  }
 0x295   : > { %779 = vst.msk [vmem:[#allocation3 + $0x10] sm:$0xff] %vm778_vm11, %v768_v29  ;;  %vm1133_vm11 = vcmask 1043456  }
 0x296   : > { %781 = vst.msk [vmem:[#allocation3 + $0x18] sm:$0xff] %vm780_vm12, %v768_v29  ;;  %v792_v32 = vpop.permute.xlu0 %791  ;;  %vm1252_vm12 = vcmask 1047812  }
 0x297   : > { %794 = vst.msk [vmem:[#allocation3] sm:$0x3] %vm782_vm13, %v792_v32  ;;  %v770_v35 = vpop.permute.xlu1 %769 }
 0x298   : > { %795 = vst.msk [vmem:[#allocation3 + $0x8] sm:$0x3] %vm784_vm14, %v792_v32  ;;  %785 = vst.msk [vmem:[#allocation3 + $0x28] sm:$0x3] %vm784_vm14, %v770_v35  ;;  %vm1259_vm14 = vcmask 1043712  }
 0x299   : > { %783 = vst.msk [vmem:[#allocation3 + $0x20] sm:$0x3] %vm782_vm13, %v770_v35  ;;  %vm1254_vm13 = vcmask 261124  }
 0x29a   : > { %v802_v38 = vpop.permute.xlu0 %801 }
 0x29b   : > { %805 = vst.msk [vmem:[#allocation3 + $0x20] sm:$0xc] %vm804_vm15, %v802_v38  ;;  %vm1261_vm15 = vcmask 257024  }
 0x29c   : > { %807 = vst.msk [vmem:[#allocation3 + $0x28] sm:$0xc] %vm806_vm0, %v802_v38  ;;  %v809_v46 = vld [vmem:[#allocation3 + $0x10] sm:$0xff]  ;;  %vm1256_vm0 = vcmask 1047808  }
 0x29d   : > { %v812_v41 = vld [vmem:[#allocation3 + $0x18] sm:$0xff]  ;;  %v2203_v38 = vld [vmem:[%s3442_s2 + $0x188] sm:$0xff] }
 0x29e   : > { %836 = vrot.lane.b32.xlu0 %v812_v41, %s2626_s12  ;;  %v808_v50 = vld [vmem:[#allocation3] sm:$0xff] }
 0x29f   : > { %v811_v44 = vld [vmem:[#allocation3 + $0x8] sm:$0xff] }
 0x2a0   : > { %834 = vrot.lane.b32.xlu1 %v811_v44, %s2626_s12 }
 0x2a2   : > { %819 = vrot.lane.b32.xlu0 %v809_v46, %s2627_s18  ;;  %v810_v56 = vld [vmem:[#allocation3 + $0x20] sm:$0xf] }
 0x2a3   : > { %v813_v57 = vld [vmem:[#allocation3 + $0x28] sm:$0xf] }
 0x2a4   : > { %817 = vrot.lane.b32.xlu1 %v808_v50, %s2627_s18 }
 0x2a6   : > { %864 = vrot.lane.b32.xlu0 %v812_v41, %s2624_s26  ;;  %v2200_v41 = vld [vmem:[%s3442_s2 + $0x170] sm:$0xff] }
 0x2a8   : > { %862 = vrot.lane.b32.xlu1 %v811_v44, %s2624_s26  ;;  %v2197_v44 = vld [vmem:[%s3442_s2 + $0x158] sm:$0xff] }
 0x2aa   : > { %850 = vrot.lane.b32.xlu0 %v809_v46, %s2628_s15  ;;  %v2195_v46 = vld [vmem:[%s3442_s2 + $0x148] sm:$0xff] }
 0x2ac   : > { %848 = vrot.lane.b32.xlu1 %v808_v50, %s2628_s15 }
 0x2ae   : > { %821 = vrot.lane.b32.xlu0 %v810_v56, %s2627_s18 }
 0x2b0   : > { %838 = vrot.lane.b32.xlu1 %v813_v57, %s2626_s12 }
 0x2b2   : > { %852 = vrot.lane.b32.xlu0 %v810_v56, %s2628_s15 }
 0x2b4   : > { %866 = vrot.lane.b32.xlu1 %v813_v57, %s2624_s26 }
 0x310   : > { %v837_v58 = vpop.permute.xlu0 %836 }
 0x311   : > { %845 = vst.msk [vmem:[#allocation3 + $0x18] sm:$0xff] %vm843_vm1, %v837_v58 }
 0x312   : > { %v835_v59 = vpop.permute.xlu1 %834 }
 0x313   : > { %844 = vst.msk [vmem:[#allocation3 + $0x8] sm:$0xff] %vm843_vm1, %v835_v59 }
 0x314   : > { %v820_v60 = vpop.permute.xlu0 %819 }
 0x315   : > { %828 = vst.msk [vmem:[#allocation3 + $0x10] sm:$0xff] %vm826_vm2, %v820_v60 }
 0x316   : > { %v818_v61 = vpop.permute.xlu1 %817 }
 0x317   : > { %827 = vst.msk [vmem:[#allocation3] sm:$0xff] %vm826_vm2, %v818_v61 }
 0x318   : > { %v865_v63 = vpop.permute.xlu0 %864 }
 0x319   : > { %873 = vst.msk [vmem:[#allocation3 + $0x18] sm:$0xff] %vm871_vm3, %v865_v63 }
 0x31a   : > { %v863_v0 = vpop.permute.xlu1 %862 }
 0x31b   : > { %872 = vst.msk [vmem:[#allocation3 + $0x8] sm:$0xff] %vm871_vm3, %v863_v0 }
 0x31c   : > { %v851_v2 = vpop.permute.xlu0 %850 }
 0x31d   : > { %859 = vst.msk [vmem:[#allocation3 + $0x10] sm:$0xff] %vm857_vm4, %v851_v2 }
 0x31e   : > { %v849_v3 = vpop.permute.xlu1 %848 }
 0x31f   : > { %858 = vst.msk [vmem:[#allocation3] sm:$0xff] %vm857_vm4, %v849_v3 }
 0x320   : > { %v822_v5 = vpop.permute.xlu0 %821  ;;  %v3009_v6 = vld [vmem:[#allocation3 + $0x18] sm:$0xff] }
 0x321   : > { %830 = vst.msk [vmem:[#allocation3 + $0x20] sm:$0xf] %vm829_vm5, %v822_v5  ;;  %v936_v13 = vrot.slane %v3009_v6, 2  ;;  %v1138_v35 = vrot.slane %v3009_v6, 4  ;;  %vm1316_vm5 = vcmask 326912  }
 0x322   : > { %v839_v7 = vpop.permute.xlu1 %838  ;;  %v877_v9 = vld [vmem:[#allocation3 + $0x8] sm:$0xff] }
 0x323   : > { %v901_v10 = vld [vmem:[#allocation3 + $0x8] sm:$0xfc]  ;;  %847 = vst.msk [vmem:[#allocation3 + $0x28] sm:$0xf] %vm846_vm6, %v839_v7  ;;  %2192 = vmatprep.mubr.msk.f32.mxu0 %vm944_vm7, %v877_v9  ;;  %vm1341_vm6 = vcmask 392512  }
 0x324   : > { %v853_v11 = vpop.permute.xlu0 %852  ;;  %v935_v12 = vrot.slane %v901_v10, 2  ;;  %v3013_v14 = vld [vmem:[#allocation3 + $0x10] sm:$0xff]  ;;  %v1105_v26 = vld [vmem:[#allocation3 + $0x8] sm:$0xf0] }
 0x325   : > { %861 = vst.msk [vmem:[#allocation3 + $0x20] sm:$0xf] %vm860_vm8, %v853_v11  ;;  %v933_v20 = vrot.slane %v3013_v14, 2  ;;  %v1137_v32 = vrot.slane %v1105_v26, 4  ;;  %v1135_v57 = vrot.slane %v3013_v14, 4  ;;  %vm1391_vm8 = vcmask 523712  }
 0x326   : > { %v937_v15 = vsel %vm931_vm9, %v935_v12, %v936_v13  ;;  %v867_v16 = vpop.permute.xlu1 %866  ;;  %v876_v17 = vld [vmem:[#allocation3] sm:$0xff]  ;;  %v2216_v11 = vld [vmem:[%s3445_s5] ss:$0 sm:$0xff] }
 0x327   : > { %2190 = vmatprep.mubr.msk.f32.mxu1 %vm944_vm7, %v937_v15  ;;  %v900_v18 = vld [vmem:[#allocation3] sm:$0xfc]  ;;  %875 = vst.msk [vmem:[#allocation3 + $0x28] sm:$0xf] %vm874_vm10, %v867_v16  ;;  %1094 = vmatmul.mubr.f32.vlgmr.msra.gmra.mxu0 %v876_v17  ;;  %v1139_v37 = vsel %vm1133_vm11, %v1137_v32, %v1138_v35  ;;  %v1482_v32 = vld [vmem:[#allocation9 + $0x270] sm:$0xff] }
 0x328   : > { %v932_v19 = vrot.slane %v900_v18, 2  ;;  %2193 = vmatprep.mubr.msk.f32.mxu0 %vm944_vm7, %v3009_v6  ;;  %v1104_v50 = vld [vmem:[#allocation3] sm:$0xf0] }
 0x329   : > { %v1134_v53 = vrot.slane %v1104_v50, 4  ;;  %v1473_v50 = vld [vmem:[#allocation9 + $0x228] sm:$0xff] }
 0x32a   : > { %v934_v22 = vsel %vm931_vm9, %v932_v19, %v933_v20 }
 0x32b   : > { %1014 = vmatmul.mubr.f32.vlgmr.msra.gmra.mxu1 %v934_v22  ;;  %1099 = vmatmul.mubr.f32.gmra.mxu0 %v3013_v14  ;;  %v1136_v58 = vsel %vm1133_vm11, %v1134_v53, %v1135_v57  ;;  %v1416_v53 = vld [vmem:[#allocation9 + $0x88] sm:$0xff] }
 0x32c   : > { %1151 = vmatpush1.msra.mxu1 %v2209_v21  ;;  %v902_v25 = vld [vmem:[#allocation3 + $0x20] sm:$0x3] }
 0x32d   : > { %1152 = vmatprep.subr.mxu1 %v2625_v8  ;;  %v938_v30 = vrot.slane %v902_v25, 2  ;;  %v1106_v56 = vld [vmem:[#allocation3 + $0x20] sm:$0xf] }
 0x32e   : > { %1153 = vmatpush1.msra.mxu1 %v2208_v23  ;;  %v903_v28 = vld [vmem:[#allocation3 + $0x28] sm:$0x3]  ;;  %v1140_v59 = vrot.slane %v1106_v56, 4 }
 0x32f   : > { %1154 = vmatprep.subr.mxu1 %v2625_v8  ;;  %v940_v29 = vrot.slane %v903_v28, 2  ;;  %v939_v36 = vsel %vm931_vm9, %v933_v20, %v938_v30  ;;  %v1107_v51 = vld [vmem:[#allocation3 + $0x28] sm:$0xf]  ;;  %v1483_v30 = vld [vmem:[#allocation9 + $0x278] sm:$0xff] }
 0x330   : > { %1155 = vmatpush1.msra.mxu1 %v2207_v24  ;;  %v1142_v55 = vrot.slane %v1107_v51, 4  ;;  %v1141_v61 = vsel %vm1133_vm11, %v1135_v57, %v1140_v59  ;;  %v1429_v28 = vld [vmem:[#allocation9 + $0xf0] sm:$0xff]  ;;  %1523 = vmatprep.subr.mxu0 %v1483_v30  ;;  %v1414_v57 = vld [vmem:[#allocation9 + $0x78] sm:$0xff]  ;;  %v1469_v59 = vld [vmem:[#allocation9 + $0x208] sm:$0xff] }
 0x331   : > { %1156 = vmatprep.subr.mxu1 %v2625_v8  ;;  %v941_v33 = vsel %vm931_vm9, %v936_v13, %v940_v29  ;;  %v1428_v29 = vld [vmem:[#allocation9 + $0xe8] sm:$0xff]  ;;  %1524 = vmatpush1.msra.mxu0 %v1482_v32  ;;  %v1417_v51 = vld [vmem:[#allocation9 + $0x90] sm:$0xff]  ;;  %vm1518_vm9 = vcmask 523264  }
 0x332   : > { %1157 = vmatpush1.msra.mxu1 %v2206_v27  ;;  %2191 = vmatprep.mubr.msk.f32.mxu1 %vm944_vm7, %v941_v33  ;;  %v1143_v60 = vsel %vm1133_vm11, %v1138_v35, %v1142_v55  ;;  %v1430_v27 = vld [vmem:[#allocation9 + $0xf8] sm:$0xff]  ;;  %v1425_v35 = vld [vmem:[#allocation9 + $0xd0] sm:$0xff]  ;;  %v1415_v55 = vld [vmem:[#allocation9 + $0x80] sm:$0xff] }
 0x333   : > { %1158 = vmatprep.subr.mxu1 %v2625_v8  ;;  %1019 = vmatmul.mubr.f32.gmra.mxu1 %v939_v36  ;;  %v1426_v33 = vld [vmem:[#allocation9 + $0xd8] sm:$0xff]  ;;  %v1480_v36 = vld [vmem:[#allocation9 + $0x260] sm:$0xff]  ;;  %v1470_v56 = vld [vmem:[#allocation9 + $0x210] sm:$0xff] }
 0x334   : > { %1159 = vmatpush1.msra.mxu1 %v2205_v31  ;;  %2214 = vmatprep.mubr.msk.f32.mxu1 %vm944_vm7, %v1139_v37  ;;  %v1427_v31 = vld [vmem:[#allocation9 + $0xe0] sm:$0xff]  ;;  %v1424_v37 = vld [vmem:[#allocation9 + $0xc8] sm:$0xff] }
 0x335   : > { %1160 = vmatprep.subr.mxu1 %v2625_v8  ;;  %v1457_v30 = vld [vmem:[#allocation9 + $0x1a8] sm:$0xff] }
 0x336   : > { %1161 = vmatpush1.msra.mxu1 %v2204_v34  ;;  %v1481_v34 = vld [vmem:[#allocation9 + $0x268] sm:$0xff] }
 0x337   : > { %1162 = vmatprep.subr.mxu1 %v2625_v8  ;;  %1525 = vmatprep.subr.mxu0 %v1481_v34  ;;  %v1400_v34 = vld [vmem:[#allocation9 + $0x8] sm:$0xff] }
 0x338   : > { %1163 = vmatpush1.msra.mxu1 %v2203_v38  ;;  %v1478_v38 = vld [vmem:[#allocation9 + $0x250] sm:$0xff]  ;;  %1526 = vmatpush1.msra.mxu0 %v1480_v36  ;;  %v1399_v36 = vld [vmem:[#allocation9] sm:$0xff] }
 0x339   : > { %1164 = vmatprep.subr.mxu1 %v2625_v8 }
 0x33a   : > { %1165 = vmatpush1.msra.mxu1 %v2202_v39  ;;  %v1423_v39 = vld [vmem:[#allocation9 + $0xc0] sm:$0xff] }
 0x33b   : > { %1166 = vmatprep.subr.mxu1 %v2625_v8 }
 0x33c   : > { %1167 = vmatpush1.msra.mxu1 %v2201_v40  ;;  %v1477_v40 = vld [vmem:[#allocation9 + $0x248] sm:$0xff] }
 0x33d   : > { %1168 = vmatprep.subr.mxu1 %v2625_v8 }
 0x33e   : > { %1169 = vmatpush1.msra.mxu1 %v2200_v41  ;;  %v1422_v41 = vld [vmem:[#allocation9 + $0xb8] sm:$0xff] }
 0x33f   : > { %1170 = vmatprep.subr.mxu1 %v2625_v8 }
 0x340   : > { %1171 = vmatpush1.msra.mxu1 %v2199_v42  ;;  %v1476_v42 = vld [vmem:[#allocation9 + $0x240] sm:$0xff] }
 0x341   : > { %1172 = vmatprep.subr.mxu1 %v2625_v8 }
 0x342   : > { %1173 = vmatpush1.msra.mxu1 %v2198_v43  ;;  %v1421_v43 = vld [vmem:[#allocation9 + $0xb0] sm:$0xff] }
 0x343   : > { %1174 = vmatprep.subr.mxu1 %v2625_v8 }
 0x344   : > { %1175 = vmatpush1.msra.mxu1 %v2197_v44  ;;  %v1475_v44 = vld [vmem:[#allocation9 + $0x238] sm:$0xff] }
 0x345   : > { %1176 = vmatprep.subr.mxu1 %v2625_v8 }
 0x346   : > { %1177 = vmatpush1.msra.mxu1 %v2196_v45  ;;  %v1420_v45 = vld [vmem:[#allocation9 + $0xa8] sm:$0xff] }
 0x347   : > { %1178 = vmatprep.subr.mxu1 %v2625_v8 }
 0x348   : > { %1179 = vmatpush1.msra.mxu1 %v2195_v46  ;;  %v1419_v46 = vld [vmem:[#allocation9 + $0xa0] sm:$0xff] }
 0x349   : > { %1180 = vmatprep.subr.mxu1 %v2625_v8 }
 0x34a   : > { %1181 = vmatpush1.msra.mxu1 %v2194_v47  ;;  %v1474_v47 = vld [vmem:[#allocation9 + $0x230] sm:$0xff] }
 0x34b   : > { %1206 = vmatprep.subr.mxu1 %v2625_v8 }
 0x34c   : > { %1207 = vmatpush2.msra.mxu1 %v2213_v48  ;;  %v1418_v48 = vld [vmem:[#allocation9 + $0x98] sm:$0xff] }
 0x34d   : > { %1208 = vmatprep.subr.mxu1 %v2625_v8 }
 0x34e   : > { %1209 = vmatpush2.msra.mxu1 %v2212_v49 }
 0x34f   : > { %1210 = vmatprep.subr.mxu1 %v2625_v8 }
 0x350   : > { %1211 = vmatpush2.msra.mxu1 %v2211_v52  ;;  %v1472_v52 = vld [vmem:[#allocation9 + $0x220] sm:$0xff] }
 0x351   : > { %1212 = vmatprep.subr.mxu1 %v2625_v8 }
 0x352   : > { %1213 = vmatpush2.msra.mxu1 %v2210_v54  ;;  %v1471_v54 = vld [vmem:[#allocation9 + $0x218] sm:$0xff] }
 0x353   : > { %1215 = vmatmul.mubr.f32.vlgmr.msra.gmra.mxu1 %v1136_v58  ;;  %1605 = vmatprep.subr.mxu1 %v1430_v27  ;;  %v1458_v27 = vld [vmem:[#allocation9 + $0x1b0] sm:$0xff] }
 0x354   : > { %2215 = vmatprep.mubr.msk.f32.mxu1 %vm944_vm7, %v1143_v60  ;;  %1606 = vmatpush1.msra.mxu1 %v1429_v28  ;;  %v1413_v60 = vld [vmem:[#allocation9 + $0x70] sm:$0xff]  ;;  %v1402_v28 = vld [vmem:[#allocation9 + $0x18] sm:$0xff] }
 0x355   : > { %1607 = vmatprep.subr.mxu1 %v1428_v29 }
 0x356   : > { %1608 = vmatpush1.msra.mxu1 %v1427_v31  ;;  %v1401_v31 = vld [vmem:[#allocation9 + $0x10] sm:$0xff] }
 0x357   : > { %1220 = vmatmul.mubr.f32.gmra.mxu1 %v1141_v61  ;;  %1609 = vmatprep.subr.mxu1 %v1426_v33  ;;  %v1456_v33 = vld [vmem:[#allocation9 + $0x1a0] sm:$0xff] }
 0x358   : > { %1610 = vmatpush1.msra.mxu1 %v1425_v35  ;;  %v1455_v35 = vld [vmem:[#allocation9 + $0x198] sm:$0xff] }
 0x359   : > { %1611 = vmatprep.subr.mxu1 %v1424_v37  ;;  %v1446_v37 = vld [vmem:[#allocation9 + $0x178] sm:$0xff] }
 0x35a   : > { %1612 = vmatpush1.msra.mxu1 %v1423_v39  ;;  %v1445_v39 = vld [vmem:[#allocation9 + $0x170] sm:$0xff] }
 0x35b   : > { %1613 = vmatprep.subr.mxu1 %v1422_v41  ;;  %v1444_v41 = vld [vmem:[#allocation9 + $0x168] sm:$0xff] }
 0x35c   : > { %1614 = vmatpush1.msra.mxu1 %v1421_v43  ;;  %v1443_v43 = vld [vmem:[#allocation9 + $0x160] sm:$0xff] }
 0x35d   : > { %1615 = vmatprep.subr.mxu1 %v1420_v45  ;;  %v1442_v45 = vld [vmem:[#allocation9 + $0x158] sm:$0xff] }
 0x35e   : > { %1616 = vmatpush1.msra.mxu1 %v1419_v46  ;;  %v1497_v46 = vld [vmem:[#allocation9 + $0x2e8] sm:$0xff] }
 0x35f   : > { %1617 = vmatprep.subr.mxu1 %v1418_v48  ;;  %v1496_v48 = vld [vmem:[#allocation9 + $0x2e0] sm:$0xff] }
 0x360   : > { %1618 = vmatpush1.msra.mxu1 %v1417_v51  ;;  %v1439_v51 = vld [vmem:[#allocation9 + $0x140] sm:$0xff] }
 0x361   : > { %1619 = vmatprep.subr.mxu1 %v1416_v53  ;;  %v1438_v53 = vld [vmem:[#allocation9 + $0x138] sm:$0xff] }
 0x362   : > { %1620 = vmatpush1.msra.mxu1 %v1415_v55  ;;  %v1437_v55 = vld [vmem:[#allocation9 + $0x130] sm:$0xff] }
 0x363   : > { %1621 = vmatprep.subr.mxu1 %v1414_v57  ;;  %v1436_v57 = vld [vmem:[#allocation9 + $0x128] sm:$0xff] }
 0x364   : > { %1622 = vmatpush1.msra.mxu1 %v1413_v60  ;;  %v1490_v60 = vld [vmem:[#allocation9 + $0x2b0] sm:$0xff] }
 0x3e7   : > { %v1095_v63 = vpop.f32.mrf.mxu0 }
 0x3e9   : > { %v1097_v0 = vpop.f32.mrf.mxu0 }
 0x3ea   : > { %v1412_v0 = vld [vmem:[#allocation9 + $0x68] sm:$0xff] }
 0x3eb   : > { %v1015_v2 = vpop.f32.mrf.mxu1  ;;  %v1100_v3 = vpop.f32.mrf.mxu0  ;;  %1623 = vmatprep.subr.mxu1 %v1412_v0  ;;  %v1433_v0 = vld [vmem:[#allocation9 + $0x110] sm:$0xff] }
 0x3ec   : > { %v1096_v9 = vadd.f32 %v1095_v63, %v1015_v2  ;;  %v1468_v63 = vld [vmem:[#allocation9 + $0x200] sm:$0xff]  ;;  %v1467_v2 = vld [vmem:[#allocation9 + $0x1f8] sm:$0xff] }
 0x3ed   : > { %v1017_v5 = vpop.f32.mrf.mxu1  ;;  %v1102_v6 = vpop.f32.mrf.mxu0 }
 0x3ee   : > { %v1466_v5 = vld [vmem:[#allocation9 + $0x1f0] sm:$0xff]  ;;  %v1410_v6 = vld [vmem:[#allocation9 + $0x58] sm:$0xff] }
 0x3f3   : > { %v1020_v7 = vpop.f32.mrf.mxu1 }
 0x3f4   : > { %v1101_v14 = vadd.f32 %v1100_v3, %v1020_v7  ;;  %v1411_v3 = vld [vmem:[#allocation9 + $0x60] sm:$0xff] }
 0x3f5   : > { %v1022_v8 = vpop.f32.mrf.mxu1  ;;  %1624 = vmatpush1.msra.mxu1 %v1411_v3  ;;  %v1432_v3 = vld [vmem:[#allocation9 + $0x108] sm:$0xff] }
 0x3f6   : > { %1625 = vmatprep.subr.mxu1 %v1410_v6  ;;  %v1465_v8 = vld [vmem:[#allocation9 + $0x1e8] sm:$0xff]  ;;  %v1431_v6 = vld [vmem:[#allocation9 + $0x100] sm:$0xff] }
 0x413   : > { %v1216_v10 = vpop.f32.mrf.mxu1 }
 0x414   : > { %v1225_v12 = vadd.f32 %v1216_v10, %v1096_v9  ;;  %v1409_v9 = vld [vmem:[#allocation9 + $0x50] sm:$0xff] }
 0x415   : > { %v1218_v13 = vpop.f32.mrf.mxu1  ;;  %1626 = vmatpush1.msra.mxu1 %v1409_v9  ;;  %v1484_v9 = vld [vmem:[#allocation9 + $0x280] sm:$0xff] }
 0x416   : > { %v1234_v15 = vadd.f32 %v2216_v11, %v1225_v12  ;;  %v1408_v12 = vld [vmem:[#allocation9 + $0x48] sm:$0xff]  ;;  %v1463_v13 = vld [vmem:[#allocation9 + $0x1d8] sm:$0xff] }
 0x417   : > { %v1221_v16 = vpop.f32.mrf.mxu1  ;;  %1627 = vmatprep.subr.mxu1 %v1408_v12 }
 0x418   : > { %v3115_v17 = vmax.f32 %v1234_v15, 0.0  ;;  %v1226_v18 = vadd.f32 %v1221_v16, %v1101_v14  ;;  %v1407_v14 = vld [vmem:[#allocation9 + $0x40] sm:$0xff]  ;;  %v1462_v15 = vld [vmem:[#allocation9 + $0x1d0] sm:$0xff]  ;;  %v1406_v16 = vld [vmem:[#allocation9 + $0x38] sm:$0xff] }
 0x419   : > { %v1223_v19 = vpop.f32.mrf.mxu1  ;;  %1628 = vmatpush1.msra.mxu1 %v1407_v14 }
 0x41a   : > { %v1235_v20 = vadd.f32 %v2216_v11, %v1226_v18  ;;  %v1240_v21 = vrot.slane %v3115_v17, 4  ;;  %v1266_v23 = vrot.slane %v3115_v17, %v2811_v1  ;;  %v1464_v11 = vld [vmem:[#allocation9 + $0x1e0] sm:$0xff]  ;;  %1629 = vmatprep.subr.mxu1 %v1406_v16  ;;  %v1461_v19 = vld [vmem:[#allocation9 + $0x1c8] sm:$0xff] }
 0x41c   : > { %v3118_v22 = vmax.f32 %v1235_v20, 0.0  ;;  %1243 = vrot.lane.b32.xlu1 %v1240_v21, %s2629_s16 }
 0x41e   : > { %v1241_v24 = vrot.slane %v3118_v22, 4  ;;  %v1276_v26 = vrot.slane %v3118_v22, %v798_v4  ;;  %v1479_v4 = vld [vmem:[#allocation9 + $0x258] sm:$0xff] }
 0x41f   : > { %1527 = vmatprep.subr.mxu0 %v1479_v4  ;;  %v1454_v4 = vld [vmem:[#allocation9 + $0x190] sm:$0xff] }
 0x420   : > { %1268 = vrot.lane.b32.xlu1 %v1266_v23, %s2629_s16  ;;  %v1242_v25 = vsel %vm1133_vm11, %v1240_v21, %v1241_v24  ;;  %1528 = vmatpush1.msra.mxu0 %v1478_v38  ;;  %v1405_v21 = vld [vmem:[#allocation9 + $0x30] sm:$0xff]  ;;  %v1460_v23 = vld [vmem:[#allocation9 + $0x1c0] sm:$0xff]  ;;  %v1453_v38 = vld [vmem:[#allocation9 + $0x188] sm:$0xff] }
 0x421   : > { %1245 = vrot.lane.b32.xlu0 %v1242_v25, %s2629_s16  ;;  %1529 = vmatprep.subr.mxu0 %v1477_v40  ;;  %v1459_v25 = vld [vmem:[#allocation9 + $0x1b8] sm:$0xff]  ;;  %v1452_v40 = vld [vmem:[#allocation9 + $0x180] sm:$0xff] }
 0x422   : > { %1530 = vmatpush1.msra.mxu0 %v1476_v42  ;;  %1630 = vmatpush1.msra.mxu1 %v1405_v21  ;;  %v1499_v42 = vld [vmem:[#allocation9 + $0x2f8] sm:$0xff] }
 0x423   : > { %1531 = vmatprep.subr.mxu0 %v1475_v44  ;;  %v1498_v44 = vld [vmem:[#allocation9 + $0x2f0] sm:$0xff] }
 0x424   : > { %1278 = vrot.lane.b32.xlu1 %v1276_v26, %s2629_s16  ;;  %1532 = vmatpush1.msra.mxu0 %v1474_v47  ;;  %v1403_v26 = vld [vmem:[#allocation9 + $0x20] sm:$0xff]  ;;  %v1441_v47 = vld [vmem:[#allocation9 + $0x150] sm:$0xff] }
 0x425   : > { %1247 = vrot.lane.b32.xlu0 %v1241_v24, %s2629_s16  ;;  %1533 = vmatprep.subr.mxu0 %v1473_v50  ;;  %v1404_v24 = vld [vmem:[#allocation9 + $0x28] sm:$0xff]  ;;  %v1495_v50 = vld [vmem:[#allocation9 + $0x2d8] sm:$0xff] }
 0x426   : > { %1534 = vmatpush1.msra.mxu0 %v1472_v52  ;;  %1631 = vmatprep.subr.mxu1 %v1404_v24  ;;  %v1494_v52 = vld [vmem:[#allocation9 + $0x2d0] sm:$0xff] }
 0x427   : > { %1535 = vmatprep.subr.mxu0 %v1471_v54  ;;  %1632 = vmatpush1.msra.mxu1 %v1403_v26  ;;  %v1493_v54 = vld [vmem:[#allocation9 + $0x2c8] sm:$0xff] }
 0x428   : > { %1536 = vmatpush1.msra.mxu0 %v1470_v56  ;;  %1633 = vmatprep.subr.mxu1 %v1402_v28  ;;  %v1492_v56 = vld [vmem:[#allocation9 + $0x2c0] sm:$0xff] }
 0x429   : > { %1537 = vmatprep.subr.mxu0 %v1469_v59  ;;  %1634 = vmatpush1.msra.mxu1 %v1401_v31  ;;  %v1435_v59 = vld [vmem:[#allocation9 + $0x120] sm:$0xff] }
 0x42a   : > { %1538 = vmatpush1.msra.mxu0 %v1468_v63  ;;  %1635 = vmatprep.subr.mxu1 %v1400_v34  ;;  %v1489_v63 = vld [vmem:[#allocation9 + $0x2a8] sm:$0xff] }
 0x42b   : > { %1539 = vmatprep.subr.mxu0 %v1467_v2  ;;  %1636 = vmatpush1.msra.mxu1 %v1399_v36  ;;  %v1488_v2 = vld [vmem:[#allocation9 + $0x2a0] sm:$0xff] }
 0x42c   : > { %1540 = vmatpush1.msra.mxu0 %v1466_v5  ;;  %1653 = vmatprep.subr.mxu1 %v1446_v37  ;;  %v1487_v5 = vld [vmem:[#allocation9 + $0x298] sm:$0xff] }
 0x42d   : > { %1541 = vmatprep.subr.mxu0 %v1465_v8  ;;  %1654 = vmatpush2.msra.mxu1 %v1445_v39  ;;  %v1485_v8 = vld [vmem:[#allocation9 + $0x288] sm:$0xff] }
 0x42e   : > { %1542 = vmatpush1.msra.mxu0 %v1464_v11  ;;  %1655 = vmatprep.subr.mxu1 %v1444_v41  ;;  %v1716_v11 = vld [vmem:[#allocation9 + $0x3f8] sm:$0xff] }
 0x42f   : > { %1543 = vmatprep.subr.mxu0 %v1463_v13  ;;  %1656 = vmatpush2.msra.mxu1 %v1443_v43 }
 0x430   : > { %1544 = vmatpush1.msra.mxu0 %v1462_v15  ;;  %1657 = vmatprep.subr.mxu1 %v1442_v45  ;;  %v1715_v45 = vld [vmem:[#allocation9 + $0x3f0] sm:$0xff] }
 0x431   : > { %1545 = vmatprep.subr.mxu0 %v1461_v19  ;;  %1658 = vmatpush2.msra.mxu1 %v1441_v47 }
 0x432   : > { %1546 = vmatpush1.msra.mxu0 %v1460_v23 }
 0x433   : > { %1547 = vmatprep.subr.mxu0 %v1459_v25 }
 0x434   : > { %1548 = vmatpush1.msra.mxu0 %v1458_v27 }
 0x435   : > { %1549 = vmatprep.subr.mxu0 %v1457_v30 }
 0x436   : > { %1550 = vmatpush1.msra.mxu0 %v1456_v33 }
 0x437   : > { %1551 = vmatprep.subr.mxu0 %v1455_v35 }
 0x438   : > { %1552 = vmatpush1.msra.mxu0 %v1454_v4 }
 0x439   : > { %1553 = vmatprep.subr.mxu0 %v1453_v38 }
 0x43a   : > { %1554 = vmatpush1.msra.mxu0 %v1452_v40 }
 0x43b   : > { %1571 = vmatprep.subr.mxu0 %v1499_v42 }
 0x43c   : > { %1572 = vmatpush2.msra.mxu0 %v1498_v44 }
 0x43d   : > { %1573 = vmatprep.subr.mxu0 %v1497_v46 }
 0x43e   : > { %1574 = vmatpush2.msra.mxu0 %v1496_v48  ;;  %v1714_v48 = vld [vmem:[#allocation9 + $0x3e8] sm:$0xff] }
 0x43f   : > { %1575 = vmatprep.subr.mxu0 %v1495_v50  ;;  %v1713_v50 = vld [vmem:[#allocation9 + $0x3e0] sm:$0xff] }
 0x440   : > { %1576 = vmatpush2.msra.mxu0 %v1494_v52  ;;  %v1711_v52 = vld [vmem:[#allocation9 + $0x3d0] sm:$0xff] }
 0x441   : > { %1577 = vmatprep.subr.mxu0 %v1493_v54  ;;  %v1710_v54 = vld [vmem:[#allocation9 + $0x3c8] sm:$0xff] }
 0x442   : > { %1578 = vmatpush2.msra.mxu0 %v1492_v56  ;;  %v1709_v56 = vld [vmem:[#allocation9 + $0x3c0] sm:$0xff] }
 0x48e   : > { %v1244_v49 = vpop.permute.xlu1 %1243 }
 0x48f   : > { %1253 = vst.msk [vmem:[#allocation4] sm:$0xf0] %vm1252_vm12, %v1244_v49 }
 0x490   : > { %1255 = vst.msk [vmem:[#allocation4 + $0x8] sm:$0xf0] %vm1254_vm13, %v1244_v49  ;;  %v1440_v49 = vld [vmem:[#allocation9 + $0x148] sm:$0xff] }
 0x491   : > { %1659 = vmatprep.subr.mxu1 %v1440_v49 }
 0x492   : > { %v1269_v58 = vpop.permute.xlu1 %1268  ;;  %1660 = vmatpush2.msra.mxu1 %v1439_v51  ;;  %v1712_v51 = vld [vmem:[#allocation9 + $0x3d8] sm:$0xff] }
 0x493   : > { %1271 = vst.msk [vmem:[#allocation4] sm:$0xf] %vm1259_vm14, %v1269_v58  ;;  %v1246_v61 = vpop.permute.xlu0 %1245  ;;  %1661 = vmatprep.subr.mxu1 %v1438_v53 }
 0x494   : > { %1272 = vst.msk [vmem:[#allocation4 + $0x8] sm:$0xf] %vm1261_vm15, %v1269_v58  ;;  %v1491_v58 = vld [vmem:[#allocation9 + $0x2b8] sm:$0xff]  ;;  %1662 = vmatpush2.msra.mxu1 %v1437_v55 }
 0x495   : > { %1257 = vst.msk [vmem:[#allocation4 + $0x10] sm:$0xff] %vm1256_vm0, %v1246_v61  ;;  %1663 = vmatprep.subr.mxu1 %v1436_v57  ;;  %1579 = vmatprep.subr.mxu0 %v1491_v58  ;;  %v1708_v57 = vld [vmem:[#allocation9 + $0x3b8] sm:$0xff]  ;;  %v1707_v58 = vld [vmem:[#allocation9 + $0x3b0] sm:$0xff] }
 0x496   : > { %1258 = vst.msk [vmem:[#allocation4 + $0x18] sm:$0xff] %vm944_vm7, %v1246_v61  ;;  %v1279_v7 = vpop.permute.xlu1 %1278  ;;  %v1434_v61 = vld [vmem:[#allocation9 + $0x118] sm:$0xff]  ;;  %1664 = vmatpush2.msra.mxu1 %v1435_v59  ;;  %1580 = vmatpush2.msra.mxu0 %v1490_v60  ;;  %vm1366_vm7 = vcmask 458112   ;;  %v1706_v59 = vld [vmem:[#allocation9 + $0x3a8] sm:$0xff]  ;;  %v1705_v60 = vld [vmem:[#allocation9 + $0x3a0] sm:$0xff] }
 0x497   : > { %1281 = vst.msk [vmem:[#allocation4 + $0x20] sm:$0xf0] %vm1252_vm12, %v1279_v7  ;;  %v1248_v10 = vpop.permute.xlu0 %1247  ;;  %1665 = vmatprep.subr.mxu1 %v1434_v61  ;;  %1581 = vmatprep.subr.mxu0 %v1489_v63  ;;  %v1704_v61 = vld [vmem:[#allocation9 + $0x398] sm:$0xff]  ;;  %v1703_v63 = vld [vmem:[#allocation9 + $0x390] sm:$0xff] }
 0x498   : > { %1282 = vst.msk [vmem:[#allocation4 + $0x28] sm:$0xf0] %vm1254_vm13, %v1279_v7  ;;  %1666 = vmatpush2.msra.mxu1 %v1433_v0  ;;  %1582 = vmatpush2.msra.mxu0 %v1488_v2  ;;  %v1486_v7 = vld [vmem:[#allocation9 + $0x290] sm:$0xff]  ;;  %v1702_v0 = vld [vmem:[#allocation9 + $0x388] sm:$0xff] }
 0x499   : > { %1260 = vst.msk [vmem:[#allocation4 + $0x20] sm:$0xf] %vm1259_vm14, %v1248_v10  ;;  %1667 = vmatprep.subr.mxu1 %v1432_v3  ;;  %1583 = vmatprep.subr.mxu0 %v1487_v5  ;;  %v1701_v3 = vld [vmem:[#allocation9 + $0x380] sm:$0xff] }
 0x49a   : > { %1262 = vst.msk [vmem:[#allocation4 + $0x28] sm:$0xf] %vm1261_vm15, %v1248_v10  ;;  %v3150_v29 = vld [vmem:[#allocation4] sm:$0xff]  ;;  %1668 = vmatpush2.msra.mxu1 %v1431_v6  ;;  %1584 = vmatpush2.msra.mxu0 %v1486_v7 }
 0x49b   : > { %v3142_v18 = vld [vmem:[#allocation4 + $0x8] sm:$0xff]  ;;  %1585 = vmatprep.subr.mxu0 %v1485_v8  ;;  %v1700_v7 = vld [vmem:[#allocation9 + $0x378] sm:$0xff] }
 0x49c   : > { %1307 = vrot.lane.b32.xlu0 %v3142_v18, %s2626_s12  ;;  %v3154_v32 = vld [vmem:[#allocation4 + $0x10] sm:$0xff]  ;;  %1586 = vmatpush2.msra.mxu0 %v1484_v9 }
 0x49d   : > { %v3146_v20 = vld [vmem:[#allocation4 + $0x18] sm:$0xff]  ;;  %1736 = vmatprep.subr.mxu0 %v1716_v11 }
 0x49e   : > { %1309 = vrot.lane.b32.xlu1 %v3146_v20, %s2626_s12 }
 0x4a0   : > { %1292 = vrot.lane.b32.xlu0 %v3150_v29, %s2630_s23  ;;  %v1285_v12 = vld [vmem:[#allocation4 + $0x20] sm:$0xff] }
 0x4a1   : > { %v1288_v10 = vld [vmem:[#allocation4 + $0x28] sm:$0xff] }
 0x4a2   : > { %1294 = vrot.lane.b32.xlu1 %v3154_v32, %s2630_s23 }
 0x4a4   : > { %1332 = vrot.lane.b32.xlu0 %v3142_v18, %s2624_s26 }
 0x4a6   : > { %1334 = vrot.lane.b32.xlu1 %v3146_v20, %s2624_s26 }
 0x4a8   : > { %1320 = vrot.lane.b32.xlu0 %v3150_v29, %s2631_s25 }
 0x4aa   : > { %1322 = vrot.lane.b32.xlu1 %v3154_v32, %s2631_s25 }
 0x4ac   : > { %1357 = vrot.lane.b32.xlu0 %v3142_v18, %s2632_s17 }
 0x4ae   : > { %1359 = vrot.lane.b32.xlu1 %v3146_v20, %s2632_s17 }
 0x4b0   : > { %1345 = vrot.lane.b32.xlu0 %v3150_v29, %s2627_s18 }
 0x4b2   : > { %1347 = vrot.lane.b32.xlu1 %v3154_v32, %s2627_s18 }
 0x4b4   : > { %1382 = vrot.lane.b32.xlu0 %v3142_v18, %s2629_s16 }
 0x4b6   : > { %1384 = vrot.lane.b32.xlu1 %v3146_v20, %s2629_s16 }
 0x4b8   : > { %1370 = vrot.lane.b32.xlu0 %v3150_v29, %s2628_s15 }
 0x4ba   : > { %1372 = vrot.lane.b32.xlu1 %v3154_v32, %s2628_s15 }
 0x4bc   : > { %1311 = vrot.lane.b32.xlu0 %v1288_v10, %s2626_s12 }
 0x4be   : > { %1296 = vrot.lane.b32.xlu1 %v1285_v12, %s2630_s23 }
 0x4c0   : > { %1336 = vrot.lane.b32.xlu0 %v1288_v10, %s2624_s26  ;;  %s3394_s26 = scalar_lea.hbm %s3451_s11, %s2230_s14 }
 0x4c2   : > { %1324 = vrot.lane.b32.xlu1 %v1285_v12, %s2631_s25 }
 0x4c4   : > { %1361 = vrot.lane.b32.xlu0 %v1288_v10, %s2632_s17 }
 0x4c6   : > { %1349 = vrot.lane.b32.xlu1 %v1285_v12, %s2627_s18 }
 0x4c8   : > { %1386 = vrot.lane.b32.xlu0 %v1288_v10, %s2629_s16  ;;  %v1699_v10 = vld [vmem:[#allocation9 + $0x370] sm:$0xff]  ;;  %s410_s16 = scalar_lea.vmem [#allocation11], %s2160_s30 }
 0x4c9   : > { %s2068_s23 = sshll.u32 %s410_s16, 4  ;;  %s3396_s23 = int_to_ptr.vmem [resolvable:$true] %s2068_s23 }
 0x4ca   : > { %1374 = vrot.lane.b32.xlu1 %v1285_v12, %s2628_s15  ;;  %v1698_v12 = vld [vmem:[#allocation9 + $0x368] sm:$0xff]  ;;  %s2044_s15 = sld [smem:[#allocation5]]  ;;  %s2546_s18 = scalar_lea.vmem %s3396_s23, 256 }
 0x4cb   : > { %p2547_p10 = scmp.ne.s32.totalorder %s3396_s23, %s2546_s18 }
 0x4cd   : > { %p2548_p12 = pnand %p2547_p10, %p2736_p5 }
 0x4cf   : > { %p2549_p8 = pneg %p2548_p12 }
 0x50e   : > { %v1308_v13 = vpop.permute.xlu0 %1307 }
 0x50f   : > { %1317 = vst.msk [vmem:[#allocation4 + $0x8] sm:$0xff] %vm1316_vm5, %v1308_v13  ;;  %v1697_v13 = vld [vmem:[#allocation9 + $0x360] sm:$0xff] }
 0x510   : > { %v1310_v14 = vpop.permute.xlu1 %1309 }
 0x511   : > { %1318 = vst.msk [vmem:[#allocation4 + $0x18] sm:$0xff] %vm1316_vm5, %v1310_v14  ;;  %v1696_v14 = vld [vmem:[#allocation9 + $0x358] sm:$0xff] }
 0x512   : > { %v1293_v15 = vpop.permute.xlu0 %1292 }
 0x513   : > { %1301 = vst.msk [vmem:[#allocation4] sm:$0xff] %vm826_vm2, %v1293_v15  ;;  %v1695_v15 = vld [vmem:[#allocation9 + $0x350] sm:$0xff] }
 0x514   : > { %v1295_v16 = vpop.permute.xlu1 %1294 }
 0x515   : > { %1302 = vst.msk [vmem:[#allocation4 + $0x10] sm:$0xff] %vm826_vm2, %v1295_v16  ;;  %v1694_v16 = vld [vmem:[#allocation9 + $0x348] sm:$0xff] }
 0x516   : > { %v1333_v18 = vpop.permute.xlu0 %1332 }
 0x517   : > { %1342 = vst.msk [vmem:[#allocation4 + $0x8] sm:$0xff] %vm1341_vm6, %v1333_v18  ;;  %v1693_v18 = vld [vmem:[#allocation9 + $0x340] sm:$0xff] }
 0x518   : > { %v1335_v19 = vpop.permute.xlu1 %1334 }
 0x519   : > { %1343 = vst.msk [vmem:[#allocation4 + $0x18] sm:$0xff] %vm1341_vm6, %v1335_v19  ;;  %v1692_v19 = vld [vmem:[#allocation9 + $0x338] sm:$0xff] }
 0x51a   : > { %v1321_v20 = vpop.permute.xlu0 %1320 }
 0x51b   : > { %1329 = vst.msk [vmem:[#allocation4] sm:$0xff] %vm857_vm4, %v1321_v20  ;;  %v1691_v20 = vld [vmem:[#allocation9 + $0x330] sm:$0xff] }
 0x51c   : > { %v1323_v21 = vpop.permute.xlu1 %1322 }
 0x51d   : > { %1330 = vst.msk [vmem:[#allocation4 + $0x10] sm:$0xff] %vm857_vm4, %v1323_v21  ;;  %v1690_v21 = vld [vmem:[#allocation9 + $0x328] sm:$0xff] }
 0x51e   : > { %v1358_v23 = vpop.permute.xlu0 %1357 }
 0x51f   : > { %1367 = vst.msk [vmem:[#allocation4 + $0x8] sm:$0xff] %vm1366_vm7, %v1358_v23  ;;  %v1689_v23 = vld [vmem:[#allocation9 + $0x320] sm:$0xff] }
 0x520   : > { %v1360_v24 = vpop.permute.xlu1 %1359 }
 0x521   : > { %1368 = vst.msk [vmem:[#allocation4 + $0x18] sm:$0xff] %vm1366_vm7, %v1360_v24  ;;  %v1688_v24 = vld [vmem:[#allocation9 + $0x318] sm:$0xff] }
 0x522   : > { %v1346_v25 = vpop.permute.xlu0 %1345 }
 0x523   : > { %1354 = vst.msk [vmem:[#allocation4] sm:$0xff] %vm843_vm1, %v1346_v25  ;;  %v1687_v25 = vld [vmem:[#allocation9 + $0x310] sm:$0xff] }
 0x524   : > { %v1348_v26 = vpop.permute.xlu1 %1347 }
 0x525   : > { %1355 = vst.msk [vmem:[#allocation4 + $0x10] sm:$0xff] %vm843_vm1, %v1348_v26  ;;  %v1686_v26 = vld [vmem:[#allocation9 + $0x308] sm:$0xff] }
 0x526   : > { %v1383_v27 = vpop.permute.xlu0 %1382 }
 0x527   : > { %1392 = vst.msk [vmem:[#allocation4 + $0x8] sm:$0xff] %vm1391_vm8, %v1383_v27  ;;  %v1685_v27 = vld [vmem:[#allocation9 + $0x300] sm:$0xff] }
 0x528   : > { %v1385_v28 = vpop.permute.xlu1 %1384 }
 0x529   : > { %1393 = vst.msk [vmem:[#allocation4 + $0x18] sm:$0xff] %vm1391_vm8, %v1385_v28  ;;  %v1732_v28 = vld [vmem:[#allocation9 + $0x478] sm:$0xff] }
 0x52a   : > { %v1371_v29 = vpop.permute.xlu0 %1370 }
 0x52b   : > { %1379 = vst.msk [vmem:[#allocation4] sm:$0xff] %vm871_vm3, %v1371_v29  ;;  %v1731_v29 = vld [vmem:[#allocation9 + $0x470] sm:$0xff] }
 0x52c   : > { %v1373_v30 = vpop.permute.xlu1 %1372 }
 0x52d   : > { %1380 = vst.msk [vmem:[#allocation4 + $0x10] sm:$0xff] %vm871_vm3, %v1373_v30  ;;  %v1730_v30 = vld [vmem:[#allocation9 + $0x468] sm:$0xff] }
 0x52e   : > { %v1312_v31 = vpop.permute.xlu0 %1311  ;;  %v1396_v32 = vld [vmem:[#allocation4 + $0x8] sm:$0xff] }
 0x52f   : > { %v1448_v33 = vld [vmem:[#allocation4 + $0x8] sm:$0xf0]  ;;  %1319 = vst.msk [vmem:[#allocation4 + $0x28] sm:$0xff] %vm1316_vm5, %v1312_v31  ;;  %2219 = vmatprep.mubr.msk.f32.mxu1 %vm1518_vm9, %v1396_v32  ;;  %v1728_v32 = vld [vmem:[#allocation9 + $0x458] sm:$0xff] }
 0x530   : > { %v1297_v34 = vpop.permute.xlu1 %1296  ;;  %v3208_v35 = vld [vmem:[#allocation4 + $0x18] sm:$0xff]  ;;  %v1509_v36 = vrot.slane %v1448_v33, 4  ;;  %v1729_v31 = vld [vmem:[#allocation9 + $0x460] sm:$0xff] }
 0x531   : > { %1303 = vst.msk [vmem:[#allocation4 + $0x20] sm:$0xff] %vm826_vm2, %v1297_v34  ;;  %v1510_v4 = vrot.slane %v3208_v35, 4  ;;  %v1727_v33 = vld [vmem:[#allocation9 + $0x450] sm:$0xff]  ;;  %v1726_v34 = vld [vmem:[#allocation9 + $0x448] sm:$0xff] }
 0x532   : > { %v1337_v37 = vpop.permute.xlu0 %1336  ;;  %v1395_v39 = vld [vmem:[#allocation4] sm:$0xff] }
 0x533   : > { %v1511_v38 = vsel %vm1133_vm11, %v1509_v36, %v1510_v4  ;;  %v1447_v40 = vld [vmem:[#allocation4] sm:$0xf0]  ;;  %1344 = vst.msk [vmem:[#allocation4 + $0x28] sm:$0xff] %vm1341_vm6, %v1337_v37  ;;  %1670 = vmatmul.mubr.f32.vlgmr.msra.gmra.mxu1 %v1395_v39  ;;  %v1722_v37 = vld [vmem:[#allocation9 + $0x428] sm:$0xff] }
 0x534   : > { %v1325_v41 = vpop.permute.xlu1 %1324  ;;  %2217 = vmatprep.mubr.msk.f32.mxu0 %vm1518_vm9, %v1511_v38  ;;  %v3215_v42 = vld [vmem:[#allocation4 + $0x10] sm:$0xff]  ;;  %v1506_v43 = vrot.slane %v1447_v40, 4  ;;  %2220 = vmatprep.mubr.msk.f32.mxu1 %vm1518_vm9, %v3208_v35  ;;  %v1724_v36 = vld [vmem:[#allocation9 + $0x438] sm:$0xff]  ;;  %v1721_v38 = vld [vmem:[#allocation9 + $0x420] sm:$0xff] }
 0x535   : > { %1331 = vst.msk [vmem:[#allocation4 + $0x20] sm:$0xff] %vm857_vm4, %v1325_v41  ;;  %v1507_v44 = vrot.slane %v3215_v42, 4  ;;  %v1720_v39 = vld [vmem:[#allocation9 + $0x418] sm:$0xff]  ;;  %v1719_v40 = vld [vmem:[#allocation9 + $0x410] sm:$0xff]  ;;  %v1718_v41 = vld [vmem:[#allocation9 + $0x408] sm:$0xff] }
 0x536   : > { %v1362_v46 = vpop.permute.xlu0 %1361 }
 0x537   : > { %v1508_v47 = vsel %vm1133_vm11, %v1506_v43, %v1507_v44  ;;  %1369 = vst.msk [vmem:[#allocation4 + $0x28] sm:$0xff] %vm1366_vm7, %v1362_v46  ;;  %1676 = vmatmul.mubr.f32.gmra.mxu1 %v3215_v42  ;;  %v1717_v43 = vld [vmem:[#allocation9 + $0x400] sm:$0xff] }
 0x538   : > { %v1350_v49 = vpop.permute.xlu1 %1349  ;;  %1588 = vmatmul.mubr.f32.vlgmr.msra.gmra.mxu0 %v1508_v47  ;;  %v1850_v47 = vld [vmem:[%s3447_s7 + $0x68] sm:$0xff] }
 0x539   : > { %1356 = vst.msk [vmem:[#allocation4 + $0x20] sm:$0xff] %vm843_vm1, %v1350_v49  ;;  %1737 = vmatpush1.msra.mxu0 %v1715_v45  ;;  %v1851_v45 = vld [vmem:[%s3447_s7 + $0x70] sm:$0xff]  ;;  %v1849_v49 = vld [vmem:[%s3447_s7 + $0x60] sm:$0xff] }
 0x53a   : > { %1738 = vmatprep.subr.mxu0 %v1714_v48  ;;  %v1387_v53 = vpop.permute.xlu0 %1386 }
 0x53b   : > { %1739 = vmatpush1.msra.mxu0 %v1713_v50  ;;  %1394 = vst.msk [vmem:[#allocation4 + $0x28] sm:$0xff] %vm1391_vm8, %v1387_v53  ;;  %v1847_v50 = vld [vmem:[%s3447_s7 + $0x50] sm:$0xff] }
 0x53c   : > { %1740 = vmatprep.subr.mxu0 %v1712_v51  ;;  %v1375_v55 = vpop.permute.xlu1 %1374  ;;  %v1846_v51 = vld [vmem:[%s3447_s7 + $0x48] sm:$0xff]  ;;  %v1843_v53 = vld [vmem:[%s3447_s7 + $0x30] sm:$0xff] }
 0x53d   : > { %1381 = vst.msk [vmem:[#allocation4 + $0x20] sm:$0xff] %vm871_vm3, %v1375_v55  ;;  %1741 = vmatpush1.msra.mxu0 %v1711_v52  ;;  %v1844_v52 = vld [vmem:[%s3447_s7 + $0x38] sm:$0xff]  ;;  %v1841_v55 = vld [vmem:[%s3447_s7 + $0x20] sm:$0xff] }
 0x53e   : > { %1742 = vmatprep.subr.mxu0 %v1710_v54  ;;  %v1842_v54 = vld [vmem:[%s3447_s7 + $0x28] sm:$0xff] }
 0x53f   : > { %1743 = vmatpush1.msra.mxu0 %v1709_v56  ;;  %v1840_v56 = vld [vmem:[%s3447_s7 + $0x18] sm:$0xff] }
 0x540   : > { %1744 = vmatprep.subr.mxu0 %v1708_v57  ;;  %v1839_v57 = vld [vmem:[%s3447_s7 + $0x10] sm:$0xff] }
 0x541   : > { %1745 = vmatpush1.msra.mxu0 %v1707_v58  ;;  %v1838_v58 = vld [vmem:[%s3447_s7 + $0x8] sm:$0xff] }
 0x542   : > { %1746 = vmatprep.subr.mxu0 %v1706_v59  ;;  %v1450_v2 = vld [vmem:[#allocation4 + $0x28] sm:$0xf]  ;;  %v1837_v59 = vld [vmem:[%s3447_s7] sm:$0xff] }
 0x543   : > { %1747 = vmatpush1.msra.mxu0 %v1705_v60  ;;  %v1514_v5 = vrot.slane %v1450_v2, 4  ;;  %v1683_v46 = vld [vmem:[#allocation4 + $0x28] sm:$0xff]  ;;  %v1884_v60 = vld [vmem:[%s3448_s8 + $0xf8] sm:$0xff]  ;;  %v1866_v2 = vld [vmem:[%s3448_s8 + $0x68] sm:$0xff] }
 0x544   : > { %1748 = vmatprep.subr.mxu0 %v1704_v61  ;;  %v1449_v6 = vld [vmem:[#allocation4 + $0x20] sm:$0xf]  ;;  %v1868_v61 = vld [vmem:[%s3448_s8 + $0x78] sm:$0xff]  ;;  %2264 = vmatprep.subr.mxu1 %v1884_v60 }
 0x545   : > { %1749 = vmatpush1.msra.mxu0 %v1703_v63  ;;  %v1512_v8 = vrot.slane %v1449_v6, 4  ;;  %v1515_v9 = vsel %vm1133_vm11, %v1510_v4, %v1514_v5  ;;  %v1723_v4 = vld [vmem:[#allocation9 + $0x430] sm:$0xff]  ;;  %v1682_v48 = vld [vmem:[#allocation4 + $0x20] sm:$0xff]  ;;  %v1883_v63 = vld [vmem:[%s3448_s8 + $0xf0] sm:$0xff]  ;;  %2265 = vmatpush3.msra.mxu1 %v1868_v61 }
 0x546   : > { %1750 = vmatprep.subr.mxu0 %v1702_v0  ;;  %2218 = vmatprep.mubr.msk.f32.mxu0 %vm1518_vm9, %v1515_v9  ;;  %v1867_v0 = vld [vmem:[%s3448_s8 + $0x70] sm:$0xff]  ;;  %v1865_v5 = vld [vmem:[%s3448_s8 + $0x60] sm:$0xff]  ;;  %v1880_v6 = vld [vmem:[%s3448_s8 + $0xd8] sm:$0xff] }
 0x547   : > { %1751 = vmatpush1.msra.mxu0 %v1701_v3  ;;  %v1513_v11 = vsel %vm1133_vm11, %v1507_v44, %v1512_v8  ;;  %v1852_v44 = vld [vmem:[%s3447_s7 + $0x78] sm:$0xff]  ;;  %2266 = vmatprep.subr.mxu1 %v1883_v63  ;;  %v1881_v3 = vld [vmem:[%s3448_s8 + $0xe0] sm:$0xff]  ;;  %v1879_v8 = vld [vmem:[%s3448_s8 + $0xd0] sm:$0xff] }
 0x548   : > { %1752 = vmatprep.subr.mxu0 %v1700_v7  ;;  %1594 = vmatmul.mubr.f32.gmra.mxu0 %v1513_v11  ;;  %v1864_v7 = vld [vmem:[%s3448_s8 + $0x58] sm:$0xff]  ;;  %v1863_v9 = vld [vmem:[%s3448_s8 + $0x50] sm:$0xff]  ;;  %v1862_v11 = vld [vmem:[%s3448_s8 + $0x48] sm:$0xff] }
 0x549   : > { %1753 = vmatpush1.msra.mxu0 %v1699_v10  ;;  %2221 = vmatprep.mubr.msk.f32.mxu0 %vm1518_vm9, %v3208_v35  ;;  %v1725_v35 = vld [vmem:[#allocation9 + $0x440] sm:$0xff]  ;;  %v1878_v10 = vld [vmem:[%s3448_s8 + $0xc8] sm:$0xff] }
 0x54a   : > { %1754 = vmatprep.subr.mxu0 %v1698_v12  ;;  %2267 = vmatpush3.msra.mxu1 %v1867_v0  ;;  %v1877_v12 = vld [vmem:[%s3448_s8 + $0xc0] sm:$0xff] }
 0x54b   : > { %1755 = vmatpush1.msra.mxu0 %v1697_v13  ;;  %v1861_v13 = vld [vmem:[%s3448_s8 + $0x40] sm:$0xff] }
 0x54c   : > { %1756 = vmatprep.subr.mxu0 %v1696_v14  ;;  %v1876_v14 = vld [vmem:[%s3448_s8 + $0xb8] sm:$0xff] }
 0x54d   : > { %1757 = vmatpush1.msra.mxu0 %v1695_v15  ;;  %v1860_v15 = vld [vmem:[%s3448_s8 + $0x38] sm:$0xff] }
 0x54e   : > { %1758 = vmatprep.subr.mxu0 %v1694_v16  ;;  %v1875_v16 = vld [vmem:[%s3448_s8 + $0xb0] sm:$0xff] }
 0x54f   : > { %1759 = vmatpush1.msra.mxu0 %v1693_v18  ;;  %v1859_v18 = vld [vmem:[%s3448_s8 + $0x30] sm:$0xff] }
 0x550   : > { %1760 = vmatprep.subr.mxu0 %v1692_v19  ;;  %v1874_v19 = vld [vmem:[%s3448_s8 + $0xa8] sm:$0xff] }
 0x551   : > { %1761 = vmatpush1.msra.mxu0 %v1691_v20  ;;  %v1858_v20 = vld [vmem:[%s3448_s8 + $0x28] sm:$0xff] }
 0x552   : > { %1762 = vmatprep.subr.mxu0 %v1690_v21  ;;  %v1873_v21 = vld [vmem:[%s3448_s8 + $0xa0] sm:$0xff] }
 0x553   : > { %1763 = vmatpush1.msra.mxu0 %v1689_v23  ;;  %v1857_v23 = vld [vmem:[%s3448_s8 + $0x20] sm:$0xff] }
 0x554   : > { %1764 = vmatprep.subr.mxu0 %v1688_v24  ;;  %v1872_v24 = vld [vmem:[%s3448_s8 + $0x98] sm:$0xff] }
 0x555   : > { %1765 = vmatpush1.msra.mxu0 %v1687_v25  ;;  %v1856_v25 = vld [vmem:[%s3448_s8 + $0x18] sm:$0xff] }
 0x556   : > { %1766 = vmatprep.subr.mxu0 %v1686_v26  ;;  %v1871_v26 = vld [vmem:[%s3448_s8 + $0x90] sm:$0xff] }
 0x557   : > { %1767 = vmatpush1.msra.mxu0 %v1685_v27  ;;  %v1855_v27 = vld [vmem:[%s3448_s8 + $0x10] sm:$0xff] }
 0x558   : > { %1784 = vmatprep.subr.mxu0 %v1732_v28  ;;  %v1870_v28 = vld [vmem:[%s3448_s8 + $0x88] sm:$0xff] }
 0x559   : > { %1785 = vmatpush2.msra.mxu0 %v1731_v29  ;;  %v1854_v29 = vld [vmem:[%s3448_s8 + $0x8] sm:$0xff] }
 0x55a   : > { %1786 = vmatprep.subr.mxu0 %v1730_v30  ;;  %v1869_v30 = vld [vmem:[%s3448_s8 + $0x80] sm:$0xff] }
 0x55b   : > { %1787 = vmatpush2.msra.mxu0 %v1729_v31  ;;  %v1853_v31 = vld [vmem:[%s3448_s8] sm:$0xff] }
 0x55c   : > { %1788 = vmatprep.subr.mxu0 %v1728_v32 }
 0x55d   : > { %1789 = vmatpush2.msra.mxu0 %v1727_v33 }
 0x55e   : > { %1790 = vmatprep.subr.mxu0 %v1726_v34 }
 0x55f   : > { %1791 = vmatpush2.msra.mxu0 %v1725_v35 }
 0x560   : > { %1792 = vmatprep.subr.mxu0 %v1724_v36 }
 0x561   : > { %1793 = vmatpush2.msra.mxu0 %v1723_v4  ;;  %v1817_v4 = vld [vmem:[%s3446_s6] sm:$0x3] }
 0x562   : > { %1794 = vmatprep.subr.mxu0 %v1722_v37  ;;  %v1825_v37 = vsub.s32 1, %v2808_v62 }
 0x563   : > { %1795 = vmatpush2.msra.mxu0 %v1721_v38 }
 0x564   : > { %1796 = vmatprep.subr.mxu0 %v1720_v39 }
 0x565   : > { %1797 = vmatpush2.msra.mxu0 %v1719_v40 }
 0x566   : > { %1798 = vmatprep.subr.mxu0 %v1718_v41 }
 0x567   : > { %1799 = vmatpush2.msra.mxu0 %v1717_v43  ;;  %v1822_v43 = vrot.slane %v1817_v4, %v2811_v1 }
 0x568   : > { %1801 = vmatmul.mubr.f32.vlgmr.msra.gmra.mxu0 %v3215_v42  ;;  %2383 = vmatprep.subr.mxu0 %v1852_v44  ;;  %v1848_v42 = vld [vmem:[%s3447_s7 + $0x58] sm:$0xff] }
 0x569   : > { %2222 = vmatprep.mubr.msk.f32.mxu0 %vm1518_vm9, %v1683_v46  ;;  %2384 = vmatpush3.msra.mxu0 %v1852_v44  ;;  %v1826_v46 = vrot.slane %v1817_v4, %v1825_v37 }
 0x56a   : > { %2385 = vmatprep.subr.mxu0 %v1851_v45 }
 0x56b   : > { %2386 = vmatpush3.msra.mxu0 %v1851_v45 }
 0x56c   : > { %1807 = vmatmul.mubr.f32.gmra.mxu0 %v1682_v48  ;;  %2387 = vmatprep.subr.mxu0 %v1850_v47 }
 0x56d   : > { %2388 = vmatpush3.msra.mxu0 %v1850_v47  ;;  %2415 = vmatprep.mubr.f32.mxu0 %v3115_v17  ;;  %v1845_v17 = vld [vmem:[%s3447_s7 + $0x40] sm:$0xff] }
 0x56e   : > { %2389 = vmatprep.subr.mxu0 %v1849_v49 }
 0x56f   : > { %2390 = vmatpush3.msra.mxu0 %v1849_v49 }
 0x570   : > { %2391 = vmatprep.subr.mxu0 %v1848_v42 }
 0x571   : > { %2392 = vmatpush3.msra.mxu0 %v1848_v42 }
 0x572   : > { %2393 = vmatprep.subr.mxu0 %v1847_v50 }
 0x573   : > { %2394 = vmatpush3.msra.mxu0 %v1847_v50 }
 0x574   : > { %2395 = vmatprep.subr.mxu0 %v1846_v51 }
 0x575   : > { %2396 = vmatpush3.msra.mxu0 %v1846_v51 }
 0x576   : > { %2397 = vmatprep.subr.mxu0 %v1845_v17 }
 0x577   : > { %2398 = vmatpush3.msra.mxu0 %v1845_v17 }
 0x578   : > { %2399 = vmatprep.subr.mxu0 %v1844_v52 }
 0x579   : > { %2400 = vmatpush3.msra.mxu0 %v1844_v52 }
 0x57a   : > { %2401 = vmatprep.subr.mxu0 %v1843_v53 }
 0x57b   : > { %2402 = vmatpush3.msra.mxu0 %v1843_v53 }
 0x57c   : > { %2403 = vmatprep.subr.mxu0 %v1842_v54 }
 0x57d   : > { %2404 = vmatpush3.msra.mxu0 %v1842_v54 }
 0x57e   : > { %2405 = vmatprep.subr.mxu0 %v1841_v55 }
 0x57f   : > { %2406 = vmatpush3.msra.mxu0 %v1841_v55 }
 0x580   : > { %2407 = vmatprep.subr.mxu0 %v1840_v56 }
 0x581   : > { %2408 = vmatpush3.msra.mxu0 %v1840_v56 }
 0x582   : > { %2409 = vmatprep.subr.mxu0 %v1839_v57 }
 0x583   : > { %2410 = vmatpush3.msra.mxu0 %v1839_v57 }
 0x584   : > { %2411 = vmatprep.subr.mxu0 %v1838_v58 }
 0x585   : > { %2412 = vmatpush3.msra.mxu0 %v1838_v58 }
 0x586   : > { %2413 = vmatprep.subr.mxu0 %v1837_v59 }
 0x587   : > { %2414 = vmatpush3.msra.mxu0 %v1837_v59 }
 0x588   : > { %2416 = vmatmul.mubr.f32.vlgmr.msra.gmra.mxu0 %v3118_v22  ;;  %v1882_v22 = vld [vmem:[%s3448_s8 + $0xe8] sm:$0xff] }
 0x589   : > { %2268 = vmatprep.subr.mxu1 %v1882_v22 }
 0x58a   : > { %2269 = vmatpush3.msra.mxu1 %v1866_v2  ;;  %v2223_v2 = vld [vmem:[%s3449_s9] ss:$0 sm:$0xff] }
 0x58b   : > { %2270 = vmatprep.subr.mxu1 %v1881_v3 }
 0x58c   : > { %2271 = vmatpush3.msra.mxu1 %v1865_v5 }
 0x58d   : > { %2272 = vmatprep.subr.mxu1 %v1880_v6  ;;  %v2047_v6 = vstv %s2044_s15  ;;  %s2633_s15 = smov [#allocation11]  }
 0x58e   : > { %2273 = vmatpush3.msra.mxu1 %v1864_v7  ;;  %s2550_s27 = sshll.u32 %s2633_s15, 4  ;;  %s2551_s27 = int_to_ptr.vmem [resolvable:$false] %s2550_s27 }
 0x58f   : > { %2274 = vmatprep.subr.mxu1 %v1879_v8  ;;  %s2552_s13 = scalar_lea.vmem %s2551_s27, 512  ;;  %p2553_p11 = scmp.lt.s32.totalorder %s3396_s23, %s2551_s27 }
 0x590   : > { %2275 = vmatpush3.msra.mxu1 %v1863_v9  ;;  %p2554_p0 = scmp.lt.s32.totalorder %s2552_s13, %s2546_s18 }
 0x591   : > { %2276 = vmatprep.subr.mxu1 %v1878_v10 }
 0x592   : > { %2277 = vmatpush3.msra.mxu1 %v1862_v11  ;;  %p2555_p1 = por %p2554_p0, %p2553_p11 }
 0x593   : > { %2278 = vmatprep.subr.mxu1 %v1877_v12 }
 0x594   : > { %2279 = vmatpush3.msra.mxu1 %v1861_v13  ;;  %p2556_p3 = pnand %p2555_p1, %p2549_p8 }
 0x595   : > { %2280 = vmatprep.subr.mxu1 %v1876_v14 }
 0x596   : > { %2281 = vmatpush3.msra.mxu1 %v1860_v15 }
 0x597   : > { %2282 = vmatprep.subr.mxu1 %v1875_v16 }
 0x598   : > { %2283 = vmatpush3.msra.mxu1 %v1859_v18 }
 0x599   : > { %2284 = vmatprep.subr.mxu1 %v1874_v19 }
 0x59a   : > { %2285 = vmatpush3.msra.mxu1 %v1858_v20 }
 0x59b   : > { %2286 = vmatprep.subr.mxu1 %v1873_v21 }
 0x59c   : > { %2287 = vmatpush3.msra.mxu1 %v1857_v23 }
 0x59d   : > { %2288 = vmatprep.subr.mxu1 %v1872_v24 }
 0x59e   : > { %2289 = vmatpush3.msra.mxu1 %v1856_v25 }
 0x59f   : > { %2290 = vmatprep.subr.mxu1 %v1871_v26 }
 0x5a0   : > { %2291 = vmatpush3.msra.mxu1 %v1855_v27 }
 0x5a1   : > { %2292 = vmatprep.subr.mxu1 %v1870_v28 }
 0x5a2   : > { %2293 = vmatpush3.msra.mxu1 %v1854_v29 }
 0x5a3   : > { %2294 = vmatprep.subr.mxu1 %v1869_v30 }
 0x5a4   : > { %2295 = vmatpush3.msra.mxu1 %v1853_v31 }
 0x5f3   : > { %v1671_v33 = vpop.f32.mrf.mxu1 }
 0x5f5   : > { %v1673_v36 = vpop.f32.mrf.mxu1 }
 0x5f7   : > { %v1677_v40 = vpop.f32.mrf.mxu1 }
 0x5f8   : > { %v1589_v32 = vpop.f32.mrf.mxu0 }
 0x5f9   : > { %v1672_v39 = vadd.f32 %v1671_v33, %v1589_v32  ;;  %v1679_v42 = vpop.f32.mrf.mxu1 }
 0x5fa   : > { %v1591_v34 = vpop.f32.mrf.mxu0 }
 0x5fb   : > { %v1674_v44 = vadd.f32 %v1673_v36, %v1591_v34 }
 0x608   : > { %v1595_v35 = vpop.f32.mrf.mxu0 }
 0x609   : > { %v1678_v48 = vadd.f32 %v1677_v40, %v1595_v35 }
 0x60a   : > { %v1597_v38 = vpop.f32.mrf.mxu0 }
 0x60b   : > { %v1680_v17 = vadd.f32 %v1679_v42, %v1597_v38 }
 0x628   : > { %v1802_v41 = vpop.f32.mrf.mxu0 }
 0x629   : > { %v1813_v45 = vadd.f32 %v1802_v41, %v1672_v39 }
 0x62a   : > { %v1804_v47 = vpop.f32.mrf.mxu0 }
 0x62b   : > { %v1814_v49 = vadd.f32 %v1804_v47, %v1674_v44  ;;  %v1829_v50 = vadd.f32 %v1822_v43, %v1813_v45 }
 0x62c   : > { %v1808_v51 = vpop.f32.mrf.mxu0 }
 0x62d   : > { %v1830_v52 = vadd.f32 %v1826_v46, %v1814_v49  ;;  %v1815_v53 = vadd.f32 %v1808_v51, %v1678_v48  ;;  %v1833_v56 = vmax.f32 %v1829_v50, 0.0 }
 0x62e   : > { %v1810_v54 = vpop.f32.mrf.mxu0 }
 0x62f   : > { %v1834_v62 = vmax.f32 %v1830_v52, 0.0  ;;  %v1816_v55 = vadd.f32 %v1810_v54, %v1680_v17  ;;  %v1831_v57 = vadd.f32 %v1822_v43, %v1815_v53 }
 0x631   : > { %v1832_v58 = vadd.f32 %v1826_v46, %v1816_v55  ;;  %1949 = vmatprep.mubr.f32.mxu1 %v1834_v62  ;;  %v1835_v59 = vmax.f32 %v1831_v57, 0.0 }
 0x632   : > { %1950 = vmatmul.mubr.f32.vlgmr.msra.gmra.mxu1 %v1833_v56 }
 0x633   : > { %v1836_v1 = vmax.f32 %v1832_v58, 0.0 }
 0x635   : > { %1954 = vmatprep.mubr.f32.mxu1 %v1836_v1 }
 0x636   : > { %1955 = vmatmul.mubr.f32.gmra.mxu1 %v1835_v59 }
 0x648   : > { %v2417_v60 = vpop.f32.mrf.mxu0 }
 0x64a   : > { %v2026_v22 = vpop.f32.mrf.mxu0 }
 0x6f2   : > { %v2296_v61 = vpop.f32.mrf.mxu1 }
 0x6f4   : > { %v2297_v63 = vpop.f32.mrf.mxu1 }
 0x6f5   : > { %v2298_v0 = vadd.f32 %v2297_v63, %v2296_v61 }
 0x6f6   : > { %v2299_v3 = vpop.f32.mrf.mxu1 }
 0x6f7   : > { %v2027_v5 = vadd.f32 %v2298_v0, %v2026_v22 }
 0x6f8   : > { %v2300_v7 = vpop.f32.mrf.mxu1 }
 0x6f9   : > { %v2042_v8 = vadd.f32 %v2223_v2, %v2027_v5  ;;  %v2301_v9 = vadd.f32 %v2300_v7, %v2299_v3 }
 0x6fb   : > { %vm2045_vm1 = vcmp.ge.f32.partialorder %v2042_v8, 0.0  ;;  %v2048_v10 = vmul.f32 %v2047_v6, %v2042_v8  ;;  %v2032_v11 = vadd.f32 %v2417_v60, %v2301_v9 }
 0x6fd   : > { %v2050_v12 = vsel %vm2045_vm1, %v2042_v8, %v2048_v10  ;;  %v2043_v13 = vadd.f32 %v2223_v2, %v2032_v11 }
 0x6fe   : > { %2052 = vst.msk [vmem:[%s410_s16] sm:$0xff] %vm1518_vm9, %v2050_v12 }
 0x6ff   : > { %vm2046_vm2 = vcmp.ge.f32.partialorder %v2043_v13, 0.0  ;;  %v2049_v14 = vmul.f32 %v2047_v6, %v2043_v13 }
 0x701   : > { %v2051_v15 = vsel %vm2046_vm2, %v2043_v13, %v2049_v14 }
 0x702   : > { %2053 = vst.msk [vmem:[%s410_s16 + $0x8] sm:$0xff] %vm1518_vm9, %v2051_v15 }
 0x703   : > { %2559 = shalt.err (!%p2556_p3)
}
 0x704   : > { %s2560_s21 = scalar_lea.hbm %s3394_s26, 256  ;;  %s2564_s16 = scalar_lea.hbm %s3451_s11, 512 }
 0x705   : > { %p2561_p2 = scmp.ne.s32.totalorder %s3394_s26, %s2560_s21  ;;  %p2565_p6 = scmp.lt.s32.totalorder %s3394_s26, %s3451_s11 }
 0x706   : > { %p2566_p9 = scmp.lt.s32.totalorder %s2564_s16, %s2560_s21 }
 0x707   : > { %p2562_p4 = pnand %p2561_p2, %p2736_p5 }
 0x708   : > { %p2567_p7 = por %p2566_p9, %p2565_p6 }
 0x709   : > { %p2563_p13 = pneg %p2562_p4 }
 0x70b   : > { %p2568_p10 = pnand %p2567_p7, %p2563_p13 }
 0x70d   : > { %2571 = shalt.err (!%p2568_p10)
}
 0x70e   : > { %s2634_s18 = smov 128  }
 0x70f   : > { %2426 = dma.vmem_to_hbm [thread:$0]  (%p2736_p5), %s3396_s23, 256, %s3394_s26, %s3399_s10, %s2634_s18, %s2634_s18, %s2626_s12  }
 0x710 PF: > { %p2443_p12 = scmp.ge.s32.totalorder %s2614_s22, 2  ;;  %s2083_s15 = sand.u32 1, %s2602_s19  }
 0x711   : > { %p3464_p8 = scmp.ne.s32.totalorder %s3457_s29, 0  ;;  %s2084_s27 = scalar_lea.sflag [#allocation8], %s2083_s15 }
 0x713   : > { %p2436_p11 = pnand %p2443_p12, %p3464_p8 }
 0x715   : > { %p2437_p0 = pneg %p2436_p11 }
 0x717   : > { %2597 = dma.done.wait (%p2437_p0), %s2084_s27, 256  }
 0x718   : > { %2599 = vsyncadd (%p2437_p0), %s2084_s27, 4294967040  ;;  %s3465_s28 = sld [smem:[#allocation15_spill]]  ;;  %p24_p1 = scmp.ge.s32.totalorder %s2723_s24, 4  }
 0x719   : > { %s3466_s21 = sld [smem:[#allocation16_spill]]  ;;  %s3467_s19 = smov %s2606_s20 }
 0x71a   : > { %s3469_s22 = smov %s2723_s24  ;;  %26 = sbr.rel (!%p24_p1) target bundleno = 7 (0x7), region = 114 }
 0x71e   : > { %s3468_s20 = smov %s3465_s28 }
 0x71f   :  { %2089 = vsyncpa [#allocation7], 1 }
 0x720   :  { %2091 = vsyncpa [#allocation7 + $0x1], 1 }
 0x721   :  { %2092 = vsyncpa [#allocation10], 1 }
 0x722   :  { %2093 = vsyncpa [#allocation8], 1 }
 0x723   :  { %2095 = vsyncpa [#allocation8 + $0x1], 1 }

</bundles_post_ra>
